<compile_context>
chip_gen: v5e
topology: v5e:2x2
jax: 0.10.0
libtpu: 0.0.40
codegen_flags: <defaults>
</compile_context>

<pallas_src>
import functools
import math

import jax
import jax.numpy as jnp
from jax.experimental import pallas as pl
from jax.experimental.pallas import tpu as pltpu

LN_EPS = 1e-12


# ----------------------------- in-kernel helpers -----------------------------

def _layernorm2d(x, gamma, beta):
    # x: (N, H); gamma/beta: (1, H); all f32.
    mean = jnp.mean(x, axis=-1, keepdims=True)
    var = jnp.mean((x - mean) ** 2, axis=-1, keepdims=True)
    return (x - mean) * jax.lax.rsqrt(var + LN_EPS) * gamma + beta


def _gelu(x):
    # TODO(synk): HF BERT default act is exact erf-GELU; tanh approx used here.
    c = math.sqrt(2.0 / math.pi)
    return 0.5 * x * (1.0 + jnp.tanh(c * (x + 0.044715 * x * x * x)))


# --------------------------------- kernel ------------------------------------

def fused_bert_absa_kernel(
        x_ref, mask_ref, eg_ref, eb_ref,
        wqkv_ref, bqkv_ref, wo_ref, bo_ref, g1_ref, b1_ref,
        wi_ref, bi_ref, wf_ref, bf_ref, g2_ref, b2_ref,
        wa_ref, ba_ref, out_ref, h_ref,
        *, num_heads, batch_tile, seq_len):
    """One (batch_tile, layer) grid step of the BertABSA forward.

    Grid = (B // Bt, L).  The activation for the current batch tile lives in
    the f32 VMEM scratch `h_ref` across layer steps.
    """
    l = pl.program_id(1)
    n_layers = pl.num_programs(1)

    S = seq_len
    Bt = batch_tile
    M, H = h_ref.shape                      # M = Bt * S
    dh = H // num_heads

    # ---- first layer step: embedding LayerNorm into the activation carry ----
    @pl.when(l == 0)
    def _():
        h_ref[...] = _layernorm2d(x_ref[...], eg_ref[...], eb_ref[...])

    h = h_ref[...]                          # (M, H) f32

    # ---- fused Q/K/V projection shared across all stacked batch rows --------
    # 1/sqrt(dh) is baked into the Q columns of wqkv/bqkv at init time.
    qkv = (jnp.dot(h.astype(jnp.bfloat16), wqkv_ref[...],
                   preferred_element_type=jnp.float32)
           + bqkv_ref[...])                 # (M, 3H) f32

    # ---- per-element multi-head attention ------------------------------------
    # Contexts for all heads / all stacked elements are concatenated once and
    # fed through a single K=H output projection (better MXU shape than nh
    # K=dh matmuls + nh wide accumulates).
    # TODO(synk): at real configs (dh=64) pad each head's lane chunk to 128 so
    # the q/k/v slices are free ref views instead of relayout copies.
    ctx_rows = []
    for b in range(Bt):
        rows = slice(b * S, (b + 1) * S)
        # Hoisted key-mask broadcast: once per element per layer, not per head.
        mask_bcast = jnp.broadcast_to(mask_ref[b], (S, S))        # (S, S) f32
        q_b = qkv[rows, 0:H]
        k_b = qkv[rows, H:2 * H]
        v_b = qkv[rows, 2 * H:3 * H]
        ctx_heads = []
        for hd in range(num_heads):
            cols = slice(hd * dh, (hd + 1) * dh)
            q_h = q_b[:, cols].astype(jnp.bfloat16)               # (S, dh)
            k_h = k_b[:, cols].astype(jnp.bfloat16)               # (S, dh)
            v_h = v_b[:, cols].astype(jnp.bfloat16)               # (S, dh)

            # Q.K^T via dot_general contracting dh (no materialized transpose).
            scores = jax.lax.dot_general(
                q_h, k_h, (((1,), (1,)), ((), ())),
                preferred_element_type=jnp.float32)               # (S, S) f32
            scores = scores + mask_bcast
            m = jnp.max(scores, axis=-1, keepdims=True)
            e = jnp.exp(scores - m)
            p = e * pl.reciprocal(jnp.sum(e, axis=-1, keepdims=True),
                                  approx=True)
            ctx_heads.append(jnp.dot(p.astype(jnp.bfloat16), v_h,
                                     preferred_element_type=jnp.float32))
        ctx_rows.append(jnp.concatenate(ctx_heads, axis=-1))      # (S, H)
    ctx = ctx_rows[0] if Bt == 1 else jnp.concatenate(ctx_rows, axis=0)

    # ---- output projection + residual + LN -----------------------------------
    attn = (jnp.dot(ctx.astype(jnp.bfloat16), wo_ref[...],
                    preferred_element_type=jnp.float32) + bo_ref[...])
    h1 = _layernorm2d(h + attn, g1_ref[...], b1_ref[...])

    # ---- feed-forward + residual + LN -----------------------------------------
    inter = _gelu(jnp.dot(h1.astype(jnp.bfloat16), wi_ref[...],
                          preferred_element_type=jnp.float32) + bi_ref[...])
    ffn = (jnp.dot(inter.astype(jnp.bfloat16), wf_ref[...],
                   preferred_element_type=jnp.float32) + bf_ref[...])
    h_new = _layernorm2d(h1 + ffn, g2_ref[...], b2_ref[...])
    h_ref[...] = h_new                      # carry to next layer step

    # ---- last layer step: aspect head; permute is done in XLA glue -----------
    @pl.when(l == n_layers - 1)
    def _():
        out_ref[...] = (jnp.dot(h_new.astype(jnp.bfloat16), wa_ref[...],
                                preferred_element_type=jnp.float32)
                        + ba_ref[...])      # (M, A) f32, lane-dense store


# ----------------------------- params & forward -------------------------------

def init_params(key, cfg):
    H, I = cfg["hidden"], cfg["intermediate"]
    V, P, T = cfg["vocab"], cfg["max_pos"], cfg["type_vocab"]
    A, L, nh = cfg["num_aspects"], cfg["layers"], cfg["heads"]
    scale = 1.0 / math.sqrt(H // nh)

    keys = iter(jax.random.split(key, 16))

    def dense(shape):
        return jax.random.normal(next(keys), shape, jnp.float32) * 0.02

    # 1/sqrt(dh) baked into the Q third of the fused QKV weight / bias.
    wqkv = dense((L, H, 3 * H)).at[:, :, :H].multiply(scale)
    bqkv = jnp.zeros((L, 1, 3 * H), jnp.float32).at[:, :, :H].multiply(scale)

    return {
        # Embedding tables stay f32 (gathered in XLA glue).
        "word_emb": dense((V, H)),
        "pos_emb": dense((P, H)),
        "type_emb": dense((T, H)),
        "emb_ln_g": jnp.ones((1, H), jnp.float32),
        "emb_ln_b": jnp.zeros((1, H), jnp.float32),
        # Per-layer weights stacked on a leading L axis; matmul weights bf16
        # (halves HBM traffic / VMEM; MXU accumulates in f32), biases/LN f32.
        "wqkv": wqkv.astype(jnp.bfloat16),
        "bqkv": bqkv,
        "wo": dense((L, H, H)).astype(jnp.bfloat16),
        "bo": jnp.zeros((L, 1, H), jnp.float32),
        "g1": jnp.ones((L, 1, H), jnp.float32),
        "b1": jnp.zeros((L, 1, H), jnp.float32),
        "wi": dense((L, H, I)).astype(jnp.bfloat16),
        "bi": jnp.zeros((L, 1, I), jnp.float32),
        "wf": dense((L, I, H)).astype(jnp.bfloat16),
        "bf": jnp.zeros((L, 1, H), jnp.float32),
        "g2": jnp.ones((L, 1, H), jnp.float32),
        "b2": jnp.zeros((L, 1, H), jnp.float32),
        "aspect_w": dense((H, A)).astype(jnp.bfloat16),
        "aspect_b": jnp.zeros((1, A), jnp.float32),
    }


def bert_absa_forward(params, input_ids, attention_mask, token_type_ids, cfg,
                      batch_tile=None):
    B, S = input_ids.shape
    H, A = cfg["hidden"], cfg["num_aspects"]
    L, nh = cfg["layers"], cfg["heads"]
    Bt = B if batch_tile is None else batch_tile
    assert B % Bt == 0, "batch must be divisible by the batch tile"

    # Embedding lookups are data-dependent gathers -> plain XLA glue.  The sum
    # is passed 2-D (B*S, H); its LayerNorm runs inside the fused kernel.
    x_sum = (params["word_emb"][input_ids]
             + params["pos_emb"][:S][None, :, :]
             + params["type_emb"][token_type_ids]
             ).reshape(B * S, H).astype(jnp.float32)

    # HF-style additive key mask, (B, 1, S).
    mask_bias = ((1.0 - attention_mask.astype(jnp.float32)) * -10000.0
                 ).reshape(B, 1, S)

    # Order must match the kernel signature.
    const_weights = {
        2: params["emb_ln_g"], 3: params["emb_ln_b"],
        16: params["aspect_w"], 17: params["aspect_b"],
    }
    layer_weights = (params["wqkv"], params["bqkv"], params["wo"], params["bo"],
                     params["g1"], params["b1"], params["wi"], params["bi"],
                     params["wf"], params["bf"], params["g2"], params["b2"])

    def _const_spec(shape):
        # Same block every step -> stays resident in VMEM.
        ndim = len(shape)
        return pl.BlockSpec(tuple(shape), lambda bi, l, _n=ndim: (0,) * _n)

    def _layer_spec(shape):
        # Stream one layer's weights per step; leading L dim blocked at 1 and
        # squeezed.  Default double-buffering prefetches layer l+1 under the
        # compute of layer l (layer axis is the innermost grid axis).
        ndim = len(shape)
        return pl.BlockSpec((None,) + tuple(shape[1:]),
                            lambda bi, l, _n=ndim: (l,) + (0,) * (_n - 1))

    in_specs = [
        pl.BlockSpec((Bt * S, H), lambda bi, l: (bi, 0)),    # embedding sum rows
        pl.BlockSpec((Bt, 1, S), lambda bi, l: (bi, 0, 0)),  # additive key mask
        _const_spec(params["emb_ln_g"].shape),
        _const_spec(params["emb_ln_b"].shape),
    ] + [_layer_spec(w.shape) for w in layer_weights] + [
        _const_spec(params["aspect_w"].shape),
        _const_spec(params["aspect_b"].shape),
    ]

    kernel = functools.partial(fused_bert_absa_kernel,
                               num_heads=nh, batch_tile=Bt, seq_len=S)

    # Grid: batch tiles ("parallel", sharded across v7x's two TCs; no-op on
    # v5e/v6e) x layers ("arbitrary", activation carried in VMEM scratch).
    # TODO(synk): for B==1 on v7x, add a parallel query-tile axis so both TCs
    # have work.
    out2d = pl.pallas_call(
        kernel,
        out_shape=jax.ShapeDtypeStruct((B * S, A), jnp.float32),
        grid=(B // Bt, L),
        in_specs=in_specs,
        out_specs=pl.BlockSpec((Bt * S, A), lambda bi, l: (bi, 0)),
        scratch_shapes=[pltpu.VMEM((Bt * S, H), jnp.float32)],
        compiler_params=pltpu.CompilerParams(
            dimension_semantics=("parallel", "arbitrary"),
            vmem_limit_bytes=48 * 1024 * 1024),
    )(x_sum, mask_bias,
      params["emb_ln_g"], params["emb_ln_b"],
      *layer_weights,
      params["aspect_w"], params["aspect_b"])

    # (B*S, A) -> (B, S, A) -> permute(0, 2, 1): done in XLA so the in-kernel
    # store stays lane-dense (no masked transposed vst).
    return out2d.reshape(B, S, A).transpose(0, 2, 1)


# ----------------------------------- main -------------------------------------

if __name__ == "__main__":
    cfg = dict(vocab=100, hidden=32, heads=2, intermediate=64,
               max_pos=16, type_vocab=2, layers=2, num_aspects=5)
    B, S = 2, 8

    key = jax.random.PRNGKey(0)
    k_params, k_ids, k_types = jax.random.split(key, 3)

    params = init_params(k_params, cfg)

    input_ids = jax.random.randint(k_ids, (B, S), 0, cfg["vocab"], dtype=jnp.int32)
    attention_mask = jnp.array(
        [[1, 1, 1, 1, 1, 1, 1, 1],
         [1, 1, 1, 1, 1, 1, 0, 0]], dtype=jnp.int32)      # second example padded
    token_type_ids = jax.random.randint(k_types, (B, S), 0, cfg["type_vocab"],
                                        dtype=jnp.int32)

    out = bert_absa_forward(params, input_ids, attention_mask, token_type_ids, cfg)
    out = jax.block_until_ready(out)

    assert out.shape == (B, cfg["num_aspects"], S), out.shape
    assert jnp.all(jnp.isfinite(out))
    print("KERNEL_OK")
</pallas_src>

<mosaic_0001>
module attributes {stable_mosaic.version = 11 : i64} {
  func.func @fused_bert_absa_kernel(%arg0: i32, %arg1: i32, %arg2: memref<16x32xf32, #tpu.memory_space<vmem>>, %arg3: memref<2x1x8xf32, #tpu.memory_space<vmem>>, %arg4: memref<1x32xf32, #tpu.memory_space<vmem>>, %arg5: memref<1x32xf32, #tpu.memory_space<vmem>>, %arg6: memref<1x32x96xbf16, #tpu.memory_space<vmem>>, %arg7: memref<1x1x96xf32, #tpu.memory_space<vmem>>, %arg8: memref<1x32x32xbf16, #tpu.memory_space<vmem>>, %arg9: memref<1x1x32xf32, #tpu.memory_space<vmem>>, %arg10: memref<1x1x32xf32, #tpu.memory_space<vmem>>, %arg11: memref<1x1x32xf32, #tpu.memory_space<vmem>>, %arg12: memref<1x32x64xbf16, #tpu.memory_space<vmem>>, %arg13: memref<1x1x64xf32, #tpu.memory_space<vmem>>, %arg14: memref<1x64x32xbf16, #tpu.memory_space<vmem>>, %arg15: memref<1x1x32xf32, #tpu.memory_space<vmem>>, %arg16: memref<1x1x32xf32, #tpu.memory_space<vmem>>, %arg17: memref<1x1x32xf32, #tpu.memory_space<vmem>>, %arg18: memref<32x5xbf16, #tpu.memory_space<vmem>>, %arg19: memref<1x5xf32, #tpu.memory_space<vmem>>, %arg20: memref<16x5xf32, #tpu.memory_space<vmem>>, %arg21: memref<16x32xf32, #tpu.memory_space<vmem>>) attributes {dimension_semantics = [#tpu.dimension_semantics<parallel>, #tpu.dimension_semantics<arbitrary>], iteration_bounds = array<i64: 1, 2>, scalar_prefetch = 0 : i64, scratch_operands = 1 : i64, tpu.core_type = #tpu.core_type<tc>, window_params = [{transform_indices = @transform_0, window_bounds = array<i64: 16, 32>}, {transform_indices = @transform_1, window_bounds = array<i64: 2, 1, 8>}, {pipeline_mode = #tpu.pipeline_mode<synchronous>, transform_indices = @transform_2, window_bounds = array<i64: 1, 32>}, {pipeline_mode = #tpu.pipeline_mode<synchronous>, transform_indices = @transform_3, window_bounds = array<i64: 1, 32>}, {transform_indices = @transform_4, window_bounds = array<i64: 1, 32, 96>}, {transform_indices = @transform_5, window_bounds = array<i64: 1, 1, 96>}, {transform_indices = @transform_6, window_bounds = array<i64: 1, 32, 32>}, {transform_indices = @transform_7, window_bounds = array<i64: 1, 1, 32>}, {transform_indices = @transform_8, window_bounds = array<i64: 1, 1, 32>}, {transform_indices = @transform_9, window_bounds = array<i64: 1, 1, 32>}, {transform_indices = @transform_10, window_bounds = array<i64: 1, 32, 64>}, {transform_indices = @transform_11, window_bounds = array<i64: 1, 1, 64>}, {transform_indices = @transform_12, window_bounds = array<i64: 1, 64, 32>}, {transform_indices = @transform_13, window_bounds = array<i64: 1, 1, 32>}, {transform_indices = @transform_14, window_bounds = array<i64: 1, 1, 32>}, {transform_indices = @transform_15, window_bounds = array<i64: 1, 1, 32>}, {pipeline_mode = #tpu.pipeline_mode<synchronous>, transform_indices = @transform_16, window_bounds = array<i64: 32, 5>}, {pipeline_mode = #tpu.pipeline_mode<synchronous>, transform_indices = @transform_17, window_bounds = array<i64: 1, 5>}, {transform_indices = @transform_18, window_bounds = array<i64: 16, 5>}]} {
    %c0_i32 = arith.constant 0 : i32
    %0 = arith.cmpi eq, %arg1, %c0_i32 : i32
    %1 = arith.extui %0 : i1 to i32
    %c0_i32_0 = arith.constant 0 : i32
    %2 = arith.cmpi ne, %1, %c0_i32_0 : i32
    scf.if %2 {
      %c0_79 = arith.constant 0 : index
      %c0_80 = arith.constant 0 : index
      %204 = vector.load %arg2[%c0_79, %c0_80] : memref<16x32xf32, #tpu.memory_space<vmem>>, vector<16x32xf32>
      %c0_81 = arith.constant 0 : index
      %c0_82 = arith.constant 0 : index
      %205 = vector.load %arg4[%c0_81, %c0_82] : memref<1x32xf32, #tpu.memory_space<vmem>>, vector<1x32xf32>
      %c0_83 = arith.constant 0 : index
      %c0_84 = arith.constant 0 : index
      %206 = vector.load %arg5[%c0_83, %c0_84] : memref<1x32xf32, #tpu.memory_space<vmem>>, vector<1x32xf32>
      %cst_85 = arith.constant dense<0.000000e+00> : vector<16xf32>
      %207 = vector.multi_reduction <add>, %204, %cst_85 [1] : vector<16x32xf32> to vector<16xf32>
      %208 = vector.shape_cast %207 : vector<16xf32> to vector<16x1xf32>
      %cst_86 = arith.constant 3.200000e+01 : f32
      %209 = vector.broadcast %cst_86 : f32 to vector<16x1xf32>
      %210 = arith.divf %208, %209 : vector<16x1xf32>
      %211 = vector.broadcast %210 : vector<16x1xf32> to vector<16x32xf32>
      %212 = arith.subf %204, %211 : vector<16x32xf32>
      %213 = arith.mulf %212, %212 : vector<16x32xf32>
      %cst_87 = arith.constant dense<0.000000e+00> : vector<16xf32>
      %214 = vector.multi_reduction <add>, %213, %cst_87 [1] : vector<16x32xf32> to vector<16xf32>
      %215 = vector.shape_cast %214 : vector<16xf32> to vector<16x1xf32>
      %cst_88 = arith.constant 3.200000e+01 : f32
      %216 = vector.broadcast %cst_88 : f32 to vector<16x1xf32>
      %217 = arith.divf %215, %216 : vector<16x1xf32>
      %218 = vector.broadcast %210 : vector<16x1xf32> to vector<16x32xf32>
      %219 = arith.subf %204, %218 : vector<16x32xf32>
      %cst_89 = arith.constant 9.99999996E-13 : f32
      %220 = vector.broadcast %cst_89 : f32 to vector<16x1xf32>
      %221 = arith.addf %217, %220 : vector<16x1xf32>
      %222 = math.rsqrt %221 : vector<16x1xf32>
      %223 = vector.broadcast %222 : vector<16x1xf32> to vector<16x32xf32>
      %224 = arith.mulf %219, %223 : vector<16x32xf32>
      %225 = vector.broadcast %205 : vector<1x32xf32> to vector<16x32xf32>
      %226 = arith.mulf %224, %225 : vector<16x32xf32>
      %227 = vector.broadcast %206 : vector<1x32xf32> to vector<16x32xf32>
      %228 = arith.addf %226, %227 : vector<16x32xf32>
      %c0_90 = arith.constant 0 : index
      %c0_91 = arith.constant 0 : index
      %229 = vector.load %arg21[%c0_90, %c0_91] : memref<16x32xf32, #tpu.memory_space<vmem>>, vector<16x32xf32>
      tpu.vector_store %arg21[%c0_90, %c0_91], %228 {strides = array<i32>} : memref<16x32xf32, #tpu.memory_space<vmem>>, vector<16x32xf32>,
    } else {
    }
    %c0 = arith.constant 0 : index
    %c0_1 = arith.constant 0 : index
    %3 = vector.load %arg21[%c0, %c0_1] : memref<16x32xf32, #tpu.memory_space<vmem>>, vector<16x32xf32>
    %4 = arith.truncf %3 : vector<16x32xf32> to vector<16x32xbf16>
    %c0_2 = arith.constant 0 : index
    %c0_3 = arith.constant 0 : index
    %c0_4 = arith.constant 0 : index
    %5 = vector.load %arg6[%c0_2, %c0_3, %c0_4] : memref<1x32x96xbf16, #tpu.memory_space<vmem>>, vector<1x32x96xbf16>
    %6 = vector.shape_cast %5 : vector<1x32x96xbf16> to vector<32x96xbf16>
    %cst = arith.constant dense<0.000000e+00> : vector<16x96xf32>
    %7 = tpu.matmul %4, %6, %cst {dimension_numbers = #tpu.dot_dimension_numbers<[1], [0], [0], [1], [0, 0, 1, 1], [], []>} : vector<16x32xbf16>, vector<32x96xbf16>, vector<16x96xf32> -> vector<16x96xf32>
    %c0_5 = arith.constant 0 : index
    %c0_6 = arith.constant 0 : index
    %c0_7 = arith.constant 0 : index
    %8 = vector.load %arg7[%c0_5, %c0_6, %c0_7] : memref<1x1x96xf32, #tpu.memory_space<vmem>>, vector<1x1x96xf32>
    %9 = vector.shape_cast %8 : vector<1x1x96xf32> to vector<1x96xf32>
    %10 = vector.broadcast %9 : vector<1x96xf32> to vector<16x96xf32>
    %11 = arith.addf %7, %10 : vector<16x96xf32>
    %c0_8 = arith.constant 0 : index
    %c0_9 = arith.constant 0 : index
    %c0_10 = arith.constant 0 : index
    %12 = vector.load %arg3[%c0_8, %c0_9, %c0_10] : memref<2x1x8xf32, #tpu.memory_space<vmem>>, vector<1x1x8xf32>
    %13 = vector.shape_cast %12 : vector<1x1x8xf32> to vector<1x8xf32>
    %14 = vector.shape_cast %13 : vector<1x8xf32> to vector<1x8xf32>
    %15 = vector.broadcast %14 : vector<1x8xf32> to vector<8x8xf32>
    %16 = vector.extract_strided_slice %11 {offsets = [0, 0], sizes = [8, 32], strides = [1, 1]} : vector<16x96xf32> to vector<8x32xf32>
    %17 = vector.extract_strided_slice %11 {offsets = [0, 32], sizes = [8, 32], strides = [1, 1]} : vector<16x96xf32> to vector<8x32xf32>
    %18 = vector.extract_strided_slice %11 {offsets = [0, 64], sizes = [8, 32], strides = [1, 1]} : vector<16x96xf32> to vector<8x32xf32>
    %19 = vector.extract_strided_slice %16 {offsets = [0, 0], sizes = [8, 16], strides = [1, 1]} : vector<8x32xf32> to vector<8x16xf32>
    %20 = arith.truncf %19 : vector<8x16xf32> to vector<8x16xbf16>
    %21 = vector.extract_strided_slice %17 {offsets = [0, 0], sizes = [8, 16], strides = [1, 1]} : vector<8x32xf32> to vector<8x16xf32>
    %22 = arith.truncf %21 : vector<8x16xf32> to vector<8x16xbf16>
    %23 = vector.extract_strided_slice %18 {offsets = [0, 0], sizes = [8, 16], strides = [1, 1]} : vector<8x32xf32> to vector<8x16xf32>
    %24 = arith.truncf %23 : vector<8x16xf32> to vector<8x16xbf16>
    %cst_11 = arith.constant dense<0.000000e+00> : vector<8x8xf32>
    %25 = tpu.matmul %20, %22, %cst_11 {dimension_numbers = #tpu.dot_dimension_numbers<[1], [1], [0], [0], [0, 0, 1, 0], [], []>} : vector<8x16xbf16>, vector<8x16xbf16>, vector<8x8xf32> -> vector<8x8xf32>
    %26 = arith.addf %25, %15 : vector<8x8xf32>
    %cst_12 = arith.constant dense<0xFF800000> : vector<8xf32>
    %27 = vector.multi_reduction <maximumf>, %26, %cst_12 [1] : vector<8x8xf32> to vector<8xf32>
    %28 = vector.shape_cast %27 : vector<8xf32> to vector<8x1xf32>
    %29 = vector.broadcast %28 : vector<8x1xf32> to vector<8x8xf32>
    %30 = arith.subf %26, %29 : vector<8x8xf32>
    %31 = math.exp %30 : vector<8x8xf32>
    %cst_13 = arith.constant dense<0.000000e+00> : vector<8xf32>
    %32 = vector.multi_reduction <add>, %31, %cst_13 [1] : vector<8x8xf32> to vector<8xf32>
    %33 = vector.shape_cast %32 : vector<8xf32> to vector<8x1xf32>
    %34 = tpu.reciprocal %33 {approx = true} : vector<8x1xf32> -> vector<8x1xf32>
    %35 = vector.broadcast %34 : vector<8x1xf32> to vector<8x8xf32>
    %36 = arith.mulf %31, %35 : vector<8x8xf32>
    %37 = arith.truncf %36 : vector<8x8xf32> to vector<8x8xbf16>
    %cst_14 = arith.constant dense<0.000000e+00> : vector<8x16xf32>
    %38 = tpu.matmul %37, %24, %cst_14 {dimension_numbers = #tpu.dot_dimension_numbers<[1], [0], [0], [1], [0, 0, 1, 1], [], []>} : vector<8x8xbf16>, vector<8x16xbf16>, vector<8x16xf32> -> vector<8x16xf32>
    %39 = vector.extract_strided_slice %16 {offsets = [0, 16], sizes = [8, 16], strides = [1, 1]} : vector<8x32xf32> to vector<8x16xf32>
    %40 = arith.truncf %39 : vector<8x16xf32> to vector<8x16xbf16>
    %41 = vector.extract_strided_slice %17 {offsets = [0, 16], sizes = [8, 16], strides = [1, 1]} : vector<8x32xf32> to vector<8x16xf32>
    %42 = arith.truncf %41 : vector<8x16xf32> to vector<8x16xbf16>
    %43 = vector.extract_strided_slice %18 {offsets = [0, 16], sizes = [8, 16], strides = [1, 1]} : vector<8x32xf32> to vector<8x16xf32>
    %44 = arith.truncf %43 : vector<8x16xf32> to vector<8x16xbf16>
    %cst_15 = arith.constant dense<0.000000e+00> : vector<8x8xf32>
    %45 = tpu.matmul %40, %42, %cst_15 {dimension_numbers = #tpu.dot_dimension_numbers<[1], [1], [0], [0], [0, 0, 1, 0], [], []>} : vector<8x16xbf16>, vector<8x16xbf16>, vector<8x8xf32> -> vector<8x8xf32>
    %46 = arith.addf %45, %15 : vector<8x8xf32>
    %cst_16 = arith.constant dense<0xFF800000> : vector<8xf32>
    %47 = vector.multi_reduction <maximumf>, %46, %cst_16 [1] : vector<8x8xf32> to vector<8xf32>
    %48 = vector.shape_cast %47 : vector<8xf32> to vector<8x1xf32>
    %49 = vector.broadcast %48 : vector<8x1xf32> to vector<8x8xf32>
    %50 = arith.subf %46, %49 : vector<8x8xf32>
    %51 = math.exp %50 : vector<8x8xf32>
    %cst_17 = arith.constant dense<0.000000e+00> : vector<8xf32>
    %52 = vector.multi_reduction <add>, %51, %cst_17 [1] : vector<8x8xf32> to vector<8xf32>
    %53 = vector.shape_cast %52 : vector<8xf32> to vector<8x1xf32>
    %54 = tpu.reciprocal %53 {approx = true} : vector<8x1xf32> -> vector<8x1xf32>
    %55 = vector.broadcast %54 : vector<8x1xf32> to vector<8x8xf32>
    %56 = arith.mulf %51, %55 : vector<8x8xf32>
    %57 = arith.truncf %56 : vector<8x8xf32> to vector<8x8xbf16>
    %cst_18 = arith.constant dense<0.000000e+00> : vector<8x16xf32>
    %58 = tpu.matmul %57, %44, %cst_18 {dimension_numbers = #tpu.dot_dimension_numbers<[1], [0], [0], [1], [0, 0, 1, 1], [], []>} : vector<8x8xbf16>, vector<8x16xbf16>, vector<8x16xf32> -> vector<8x16xf32>
    %59 = tpu.concatenate %38, %58 in 1 : vector<8x16xf32>, vector<8x16xf32> -> vector<8x32xf32>
    %c1 = arith.constant 1 : index
    %c0_19 = arith.constant 0 : index
    %c0_20 = arith.constant 0 : index
    %60 = vector.load %arg3[%c1, %c0_19, %c0_20] : memref<2x1x8xf32, #tpu.memory_space<vmem>>, vector<1x1x8xf32>
    %61 = vector.shape_cast %60 : vector<1x1x8xf32> to vector<1x8xf32>
    %62 = vector.shape_cast %61 : vector<1x8xf32> to vector<1x8xf32>
    %63 = vector.broadcast %62 : vector<1x8xf32> to vector<8x8xf32>
    %64 = vector.extract_strided_slice %11 {offsets = [8, 0], sizes = [8, 32], strides = [1, 1]} : vector<16x96xf32> to vector<8x32xf32>
    %65 = vector.extract_strided_slice %11 {offsets = [8, 32], sizes = [8, 32], strides = [1, 1]} : vector<16x96xf32> to vector<8x32xf32>
    %66 = vector.extract_strided_slice %11 {offsets = [8, 64], sizes = [8, 32], strides = [1, 1]} : vector<16x96xf32> to vector<8x32xf32>
    %67 = vector.extract_strided_slice %64 {offsets = [0, 0], sizes = [8, 16], strides = [1, 1]} : vector<8x32xf32> to vector<8x16xf32>
    %68 = arith.truncf %67 : vector<8x16xf32> to vector<8x16xbf16>
    %69 = vector.extract_strided_slice %65 {offsets = [0, 0], sizes = [8, 16], strides = [1, 1]} : vector<8x32xf32> to vector<8x16xf32>
    %70 = arith.truncf %69 : vector<8x16xf32> to vector<8x16xbf16>
    %71 = vector.extract_strided_slice %66 {offsets = [0, 0], sizes = [8, 16], strides = [1, 1]} : vector<8x32xf32> to vector<8x16xf32>
    %72 = arith.truncf %71 : vector<8x16xf32> to vector<8x16xbf16>
    %cst_21 = arith.constant dense<0.000000e+00> : vector<8x8xf32>
    %73 = tpu.matmul %68, %70, %cst_21 {dimension_numbers = #tpu.dot_dimension_numbers<[1], [1], [0], [0], [0, 0, 1, 0], [], []>} : vector<8x16xbf16>, vector<8x16xbf16>, vector<8x8xf32> -> vector<8x8xf32>
    %74 = arith.addf %73, %63 : vector<8x8xf32>
    %cst_22 = arith.constant dense<0xFF800000> : vector<8xf32>
    %75 = vector.multi_reduction <maximumf>, %74, %cst_22 [1] : vector<8x8xf32> to vector<8xf32>
    %76 = vector.shape_cast %75 : vector<8xf32> to vector<8x1xf32>
    %77 = vector.broadcast %76 : vector<8x1xf32> to vector<8x8xf32>
    %78 = arith.subf %74, %77 : vector<8x8xf32>
    %79 = math.exp %78 : vector<8x8xf32>
    %cst_23 = arith.constant dense<0.000000e+00> : vector<8xf32>
    %80 = vector.multi_reduction <add>, %79, %cst_23 [1] : vector<8x8xf32> to vector<8xf32>
    %81 = vector.shape_cast %80 : vector<8xf32> to vector<8x1xf32>
    %82 = tpu.reciprocal %81 {approx = true} : vector<8x1xf32> -> vector<8x1xf32>
    %83 = vector.broadcast %82 : vector<8x1xf32> to vector<8x8xf32>
    %84 = arith.mulf %79, %83 : vector<8x8xf32>
    %85 = arith.truncf %84 : vector<8x8xf32> to vector<8x8xbf16>
    %cst_24 = arith.constant dense<0.000000e+00> : vector<8x16xf32>
    %86 = tpu.matmul %85, %72, %cst_24 {dimension_numbers = #tpu.dot_dimension_numbers<[1], [0], [0], [1], [0, 0, 1, 1], [], []>} : vector<8x8xbf16>, vector<8x16xbf16>, vector<8x16xf32> -> vector<8x16xf32>
    %87 = vector.extract_strided_slice %64 {offsets = [0, 16], sizes = [8, 16], strides = [1, 1]} : vector<8x32xf32> to vector<8x16xf32>
    %88 = arith.truncf %87 : vector<8x16xf32> to vector<8x16xbf16>
    %89 = vector.extract_strided_slice %65 {offsets = [0, 16], sizes = [8, 16], strides = [1, 1]} : vector<8x32xf32> to vector<8x16xf32>
    %90 = arith.truncf %89 : vector<8x16xf32> to vector<8x16xbf16>
    %91 = vector.extract_strided_slice %66 {offsets = [0, 16], sizes = [8, 16], strides = [1, 1]} : vector<8x32xf32> to vector<8x16xf32>
    %92 = arith.truncf %91 : vector<8x16xf32> to vector<8x16xbf16>
    %cst_25 = arith.constant dense<0.000000e+00> : vector<8x8xf32>
    %93 = tpu.matmul %88, %90, %cst_25 {dimension_numbers = #tpu.dot_dimension_numbers<[1], [1], [0], [0], [0, 0, 1, 0], [], []>} : vector<8x16xbf16>, vector<8x16xbf16>, vector<8x8xf32> -> vector<8x8xf32>
    %94 = arith.addf %93, %63 : vector<8x8xf32>
    %cst_26 = arith.constant dense<0xFF800000> : vector<8xf32>
    %95 = vector.multi_reduction <maximumf>, %94, %cst_26 [1] : vector<8x8xf32> to vector<8xf32>
    %96 = vector.shape_cast %95 : vector<8xf32> to vector<8x1xf32>
    %97 = vector.broadcast %96 : vector<8x1xf32> to vector<8x8xf32>
    %98 = arith.subf %94, %97 : vector<8x8xf32>
    %99 = math.exp %98 : vector<8x8xf32>
    %cst_27 = arith.constant dense<0.000000e+00> : vector<8xf32>
    %100 = vector.multi_reduction <add>, %99, %cst_27 [1] : vector<8x8xf32> to vector<8xf32>
    %101 = vector.shape_cast %100 : vector<8xf32> to vector<8x1xf32>
    %102 = tpu.reciprocal %101 {approx = true} : vector<8x1xf32> -> vector<8x1xf32>
    %103 = vector.broadcast %102 : vector<8x1xf32> to vector<8x8xf32>
    %104 = arith.mulf %99, %103 : vector<8x8xf32>
    %105 = arith.truncf %104 : vector<8x8xf32> to vector<8x8xbf16>
    %cst_28 = arith.constant dense<0.000000e+00> : vector<8x16xf32>
    %106 = tpu.matmul %105, %92, %cst_28 {dimension_numbers = #tpu.dot_dimension_numbers<[1], [0], [0], [1], [0, 0, 1, 1], [], []>} : vector<8x8xbf16>, vector<8x16xbf16>, vector<8x16xf32> -> vector<8x16xf32>
    %107 = tpu.concatenate %86, %106 in 1 : vector<8x16xf32>, vector<8x16xf32> -> vector<8x32xf32>
    %108 = tpu.concatenate %59, %107 in 0 : vector<8x32xf32>, vector<8x32xf32> -> vector<16x32xf32>
    %109 = arith.truncf %108 : vector<16x32xf32> to vector<16x32xbf16>
    %c0_29 = arith.constant 0 : index
    %c0_30 = arith.constant 0 : index
    %c0_31 = arith.constant 0 : index
    %110 = vector.load %arg8[%c0_29, %c0_30, %c0_31] : memref<1x32x32xbf16, #tpu.memory_space<vmem>>, vector<1x32x32xbf16>
    %111 = vector.shape_cast %110 : vector<1x32x32xbf16> to vector<32x32xbf16>
    %cst_32 = arith.constant dense<0.000000e+00> : vector<16x32xf32>
    %112 = tpu.matmul %109, %111, %cst_32 {dimension_numbers = #tpu.dot_dimension_numbers<[1], [0], [0], [1], [0, 0, 1, 1], [], []>} : vector<16x32xbf16>, vector<32x32xbf16>, vector<16x32xf32> -> vector<16x32xf32>
    %c0_33 = arith.constant 0 : index
    %c0_34 = arith.constant 0 : index
    %c0_35 = arith.constant 0 : index
    %113 = vector.load %arg9[%c0_33, %c0_34, %c0_35] : memref<1x1x32xf32, #tpu.memory_space<vmem>>, vector<1x1x32xf32>
    %114 = vector.shape_cast %113 : vector<1x1x32xf32> to vector<1x32xf32>
    %115 = vector.broadcast %114 : vector<1x32xf32> to vector<16x32xf32>
    %116 = arith.addf %112, %115 : vector<16x32xf32>
    %117 = arith.addf %3, %116 : vector<16x32xf32>
    %c0_36 = arith.constant 0 : index
    %c0_37 = arith.constant 0 : index
    %c0_38 = arith.constant 0 : index
    %118 = vector.load %arg10[%c0_36, %c0_37, %c0_38] : memref<1x1x32xf32, #tpu.memory_space<vmem>>, vector<1x1x32xf32>
    %119 = vector.shape_cast %118 : vector<1x1x32xf32> to vector<1x32xf32>
    %c0_39 = arith.constant 0 : index
    %c0_40 = arith.constant 0 : index
    %c0_41 = arith.constant 0 : index
    %120 = vector.load %arg11[%c0_39, %c0_40, %c0_41] : memref<1x1x32xf32, #tpu.memory_space<vmem>>, vector<1x1x32xf32>
    %121 = vector.shape_cast %120 : vector<1x1x32xf32> to vector<1x32xf32>
    %cst_42 = arith.constant dense<0.000000e+00> : vector<16xf32>
    %122 = vector.multi_reduction <add>, %117, %cst_42 [1] : vector<16x32xf32> to vector<16xf32>
    %123 = vector.shape_cast %122 : vector<16xf32> to vector<16x1xf32>
    %cst_43 = arith.constant 3.200000e+01 : f32
    %124 = vector.broadcast %cst_43 : f32 to vector<16x1xf32>
    %125 = arith.divf %123, %124 : vector<16x1xf32>
    %126 = vector.broadcast %125 : vector<16x1xf32> to vector<16x32xf32>
    %127 = arith.subf %117, %126 : vector<16x32xf32>
    %128 = arith.mulf %127, %127 : vector<16x32xf32>
    %cst_44 = arith.constant dense<0.000000e+00> : vector<16xf32>
    %129 = vector.multi_reduction <add>, %128, %cst_44 [1] : vector<16x32xf32> to vector<16xf32>
    %130 = vector.shape_cast %129 : vector<16xf32> to vector<16x1xf32>
    %cst_45 = arith.constant 3.200000e+01 : f32
    %131 = vector.broadcast %cst_45 : f32 to vector<16x1xf32>
    %132 = arith.divf %130, %131 : vector<16x1xf32>
    %133 = vector.broadcast %125 : vector<16x1xf32> to vector<16x32xf32>
    %134 = arith.subf %117, %133 : vector<16x32xf32>
    %cst_46 = arith.constant 9.99999996E-13 : f32
    %135 = vector.broadcast %cst_46 : f32 to vector<16x1xf32>
    %136 = arith.addf %132, %135 : vector<16x1xf32>
    %137 = math.rsqrt %136 : vector<16x1xf32>
    %138 = vector.broadcast %137 : vector<16x1xf32> to vector<16x32xf32>
    %139 = arith.mulf %134, %138 : vector<16x32xf32>
    %140 = vector.broadcast %119 : vector<1x32xf32> to vector<16x32xf32>
    %141 = arith.mulf %139, %140 : vector<16x32xf32>
    %142 = vector.broadcast %121 : vector<1x32xf32> to vector<16x32xf32>
    %143 = arith.addf %141, %142 : vector<16x32xf32>
    %144 = arith.truncf %143 : vector<16x32xf32> to vector<16x32xbf16>
    %c0_47 = arith.constant 0 : index
    %c0_48 = arith.constant 0 : index
    %c0_49 = arith.constant 0 : index
    %145 = vector.load %arg12[%c0_47, %c0_48, %c0_49] : memref<1x32x64xbf16, #tpu.memory_space<vmem>>, vector<1x32x64xbf16>
    %146 = vector.shape_cast %145 : vector<1x32x64xbf16> to vector<32x64xbf16>
    %cst_50 = arith.constant dense<0.000000e+00> : vector<16x64xf32>
    %147 = tpu.matmul %144, %146, %cst_50 {dimension_numbers = #tpu.dot_dimension_numbers<[1], [0], [0], [1], [0, 0, 1, 1], [], []>} : vector<16x32xbf16>, vector<32x64xbf16>, vector<16x64xf32> -> vector<16x64xf32>
    %c0_51 = arith.constant 0 : index
    %c0_52 = arith.constant 0 : index
    %c0_53 = arith.constant 0 : index
    %148 = vector.load %arg13[%c0_51, %c0_52, %c0_53] : memref<1x1x64xf32, #tpu.memory_space<vmem>>, vector<1x1x64xf32>
    %149 = vector.shape_cast %148 : vector<1x1x64xf32> to vector<1x64xf32>
    %150 = vector.broadcast %149 : vector<1x64xf32> to vector<16x64xf32>
    %151 = arith.addf %147, %150 : vector<16x64xf32>
    %cst_54 = arith.constant 5.000000e-01 : f32
    %152 = vector.broadcast %cst_54 : f32 to vector<16x64xf32>
    %153 = arith.mulf %152, %151 : vector<16x64xf32>
    %cst_55 = arith.constant 4.471500e-02 : f32
    %154 = vector.broadcast %cst_55 : f32 to vector<16x64xf32>
    %155 = arith.mulf %154, %151 : vector<16x64xf32>
    %156 = arith.mulf %155, %151 : vector<16x64xf32>
    %157 = arith.mulf %156, %151 : vector<16x64xf32>
    %158 = arith.addf %151, %157 : vector<16x64xf32>
    %cst_56 = arith.constant 0.797884583 : f32
    %159 = vector.broadcast %cst_56 : f32 to vector<16x64xf32>
    %160 = arith.mulf %159, %158 : vector<16x64xf32>
    %161 = math.tanh %160 : vector<16x64xf32>
    %cst_57 = arith.constant 1.000000e+00 : f32
    %162 = vector.broadcast %cst_57 : f32 to vector<16x64xf32>
    %163 = arith.addf %162, %161 : vector<16x64xf32>
    %164 = arith.mulf %153, %163 : vector<16x64xf32>
    %165 = arith.truncf %164 : vector<16x64xf32> to vector<16x64xbf16>
    %c0_58 = arith.constant 0 : index
    %c0_59 = arith.constant 0 : index
    %c0_60 = arith.constant 0 : index
    %166 = vector.load %arg14[%c0_58, %c0_59, %c0_60] : memref<1x64x32xbf16, #tpu.memory_space<vmem>>, vector<1x64x32xbf16>
    %167 = vector.shape_cast %166 : vector<1x64x32xbf16> to vector<64x32xbf16>
    %cst_61 = arith.constant dense<0.000000e+00> : vector<16x32xf32>
    %168 = tpu.matmul %165, %167, %cst_61 {dimension_numbers = #tpu.dot_dimension_numbers<[1], [0], [0], [1], [0, 0, 1, 1], [], []>} : vector<16x64xbf16>, vector<64x32xbf16>, vector<16x32xf32> -> vector<16x32xf32>
    %c0_62 = arith.constant 0 : index
    %c0_63 = arith.constant 0 : index
    %c0_64 = arith.constant 0 : index
    %169 = vector.load %arg15[%c0_62, %c0_63, %c0_64] : memref<1x1x32xf32, #tpu.memory_space<vmem>>, vector<1x1x32xf32>
    %170 = vector.shape_cast %169 : vector<1x1x32xf32> to vector<1x32xf32>
    %171 = vector.broadcast %170 : vector<1x32xf32> to vector<16x32xf32>
    %172 = arith.addf %168, %171 : vector<16x32xf32>
    %173 = arith.addf %143, %172 : vector<16x32xf32>
    %c0_65 = arith.constant 0 : index
    %c0_66 = arith.constant 0 : index
    %c0_67 = arith.constant 0 : index
    %174 = vector.load %arg16[%c0_65, %c0_66, %c0_67] : memref<1x1x32xf32, #tpu.memory_space<vmem>>, vector<1x1x32xf32>
    %175 = vector.shape_cast %174 : vector<1x1x32xf32> to vector<1x32xf32>
    %c0_68 = arith.constant 0 : index
    %c0_69 = arith.constant 0 : index
    %c0_70 = arith.constant 0 : index
    %176 = vector.load %arg17[%c0_68, %c0_69, %c0_70] : memref<1x1x32xf32, #tpu.memory_space<vmem>>, vector<1x1x32xf32>
    %177 = vector.shape_cast %176 : vector<1x1x32xf32> to vector<1x32xf32>
    %cst_71 = arith.constant dense<0.000000e+00> : vector<16xf32>
    %178 = vector.multi_reduction <add>, %173, %cst_71 [1] : vector<16x32xf32> to vector<16xf32>
    %179 = vector.shape_cast %178 : vector<16xf32> to vector<16x1xf32>
    %cst_72 = arith.constant 3.200000e+01 : f32
    %180 = vector.broadcast %cst_72 : f32 to vector<16x1xf32>
    %181 = arith.divf %179, %180 : vector<16x1xf32>
    %182 = vector.broadcast %181 : vector<16x1xf32> to vector<16x32xf32>
    %183 = arith.subf %173, %182 : vector<16x32xf32>
    %184 = arith.mulf %183, %183 : vector<16x32xf32>
    %cst_73 = arith.constant dense<0.000000e+00> : vector<16xf32>
    %185 = vector.multi_reduction <add>, %184, %cst_73 [1] : vector<16x32xf32> to vector<16xf32>
    %186 = vector.shape_cast %185 : vector<16xf32> to vector<16x1xf32>
    %cst_74 = arith.constant 3.200000e+01 : f32
    %187 = vector.broadcast %cst_74 : f32 to vector<16x1xf32>
    %188 = arith.divf %186, %187 : vector<16x1xf32>
    %189 = vector.broadcast %181 : vector<16x1xf32> to vector<16x32xf32>
    %190 = arith.subf %173, %189 : vector<16x32xf32>
    %cst_75 = arith.constant 9.99999996E-13 : f32
    %191 = vector.broadcast %cst_75 : f32 to vector<16x1xf32>
    %192 = arith.addf %188, %191 : vector<16x1xf32>
    %193 = math.rsqrt %192 : vector<16x1xf32>
    %194 = vector.broadcast %193 : vector<16x1xf32> to vector<16x32xf32>
    %195 = arith.mulf %190, %194 : vector<16x32xf32>
    %196 = vector.broadcast %175 : vector<1x32xf32> to vector<16x32xf32>
    %197 = arith.mulf %195, %196 : vector<16x32xf32>
    %198 = vector.broadcast %177 : vector<1x32xf32> to vector<16x32xf32>
    %199 = arith.addf %197, %198 : vector<16x32xf32>
    %c0_76 = arith.constant 0 : index
    %c0_77 = arith.constant 0 : index
    %200 = vector.load %arg21[%c0_76, %c0_77] : memref<16x32xf32, #tpu.memory_space<vmem>>, vector<16x32xf32>
    tpu.vector_store %arg21[%c0_76, %c0_77], %199 {strides = array<i32>} : memref<16x32xf32, #tpu.memory_space<vmem>>, vector<16x32xf32>,
    %c1_i32 = arith.constant 1 : i32
    %201 = arith.cmpi eq, %arg1, %c1_i32 : i32
    %202 = arith.extui %201 : i1 to i32
    %c0_i32_78 = arith.constant 0 : i32
    %203 = arith.cmpi ne, %202, %c0_i32_78 : i32
    scf.if %203 {
      %204 = arith.truncf %199 : vector<16x32xf32> to vector<16x32xbf16>
      %c0_79 = arith.constant 0 : index
      %c0_80 = arith.constant 0 : index
      %205 = vector.load %arg18[%c0_79, %c0_80] : memref<32x5xbf16, #tpu.memory_space<vmem>>, vector<32x5xbf16>
      %cst_81 = arith.constant dense<0.000000e+00> : vector<16x5xf32>
      %206 = tpu.matmul %204, %205, %cst_81 {dimension_numbers = #tpu.dot_dimension_numbers<[1], [0], [0], [1], [0, 0, 1, 1], [], []>} : vector<16x32xbf16>, vector<32x5xbf16>, vector<16x5xf32> -> vector<16x5xf32>
      %c0_82 = arith.constant 0 : index
      %c0_83 = arith.constant 0 : index
      %207 = vector.load %arg19[%c0_82, %c0_83] : memref<1x5xf32, #tpu.memory_space<vmem>>, vector<1x5xf32>
      %208 = vector.broadcast %207 : vector<1x5xf32> to vector<16x5xf32>
      %209 = arith.addf %206, %208 : vector<16x5xf32>
      %c0_84 = arith.constant 0 : index
      %c0_85 = arith.constant 0 : index
      %210 = vector.load %arg20[%c0_84, %c0_85] : memref<16x5xf32, #tpu.memory_space<vmem>>, vector<16x5xf32>
      tpu.vector_store %arg20[%c0_84, %c0_85], %209 {strides = array<i32>} : memref<16x5xf32, #tpu.memory_space<vmem>>, vector<16x5xf32>,
    } else {
    }
    return
  }
  func.func @transform_0(%arg0: i32, %arg1: i32) -> (i32, i32) {
    %c0_i32 = arith.constant 0 : i32
    %c0_i32_0 = arith.constant 0 : i32
    return %arg0, %c0_i32 : i32, i32
  }
  func.func @transform_1(%arg0: i32, %arg1: i32) -> (i32, i32, i32) {
    %c0_i32 = arith.constant 0 : i32
    %c0_i32_0 = arith.constant 0 : i32
    %c0_i32_1 = arith.constant 0 : i32
    return %arg0, %c0_i32, %c0_i32_0 : i32, i32, i32
  }
  func.func @transform_2(%arg0: i32, %arg1: i32) -> (i32, i32) {
    %c0_i32 = arith.constant 0 : i32
    %c0_i32_0 = arith.constant 0 : i32
    %c0_i32_1 = arith.constant 0 : i32
    return %c0_i32, %c0_i32_0 : i32, i32
  }
  func.func @transform_3(%arg0: i32, %arg1: i32) -> (i32, i32) {
    %c0_i32 = arith.constant 0 : i32
    %c0_i32_0 = arith.constant 0 : i32
    %c0_i32_1 = arith.constant 0 : i32
    return %c0_i32, %c0_i32_0 : i32, i32
  }
  func.func @transform_4(%arg0: i32, %arg1: i32) -> (i32, i32, i32) {
    %c0_i32 = arith.constant 0 : i32
    %c0_i32_0 = arith.constant 0 : i32
    %c0_i32_1 = arith.constant 0 : i32
    return %arg1, %c0_i32, %c0_i32_0 : i32, i32, i32
  }
  func.func @transform_5(%arg0: i32, %arg1: i32) -> (i32, i32, i32) {
    %c0_i32 = arith.constant 0 : i32
    %c0_i32_0 = arith.constant 0 : i32
    %c0_i32_1 = arith.constant 0 : i32
    return %arg1, %c0_i32, %c0_i32_0 : i32, i32, i32
  }
  func.func @transform_6(%arg0: i32, %arg1: i32) -> (i32, i32, i32) {
    %c0_i32 = arith.constant 0 : i32
    %c0_i32_0 = arith.constant 0 : i32
    %c0_i32_1 = arith.constant 0 : i32
    return %arg1, %c0_i32, %c0_i32_0 : i32, i32, i32
  }
  func.func @transform_7(%arg0: i32, %arg1: i32) -> (i32, i32, i32) {
    %c0_i32 = arith.constant 0 : i32
    %c0_i32_0 = arith.constant 0 : i32
    %c0_i32_1 = arith.constant 0 : i32
    return %arg1, %c0_i32, %c0_i32_0 : i32, i32, i32
  }
  func.func @transform_8(%arg0: i32, %arg1: i32) -> (i32, i32, i32) {
    %c0_i32 = arith.constant 0 : i32
    %c0_i32_0 = arith.constant 0 : i32
    %c0_i32_1 = arith.constant 0 : i32
    return %arg1, %c0_i32, %c0_i32_0 : i32, i32, i32
  }
  func.func @transform_9(%arg0: i32, %arg1: i32) -> (i32, i32, i32) {
    %c0_i32 = arith.constant 0 : i32
    %c0_i32_0 = arith.constant 0 : i32
    %c0_i32_1 = arith.constant 0 : i32
    return %arg1, %c0_i32, %c0_i32_0 : i32, i32, i32
  }
  func.func @transform_10(%arg0: i32, %arg1: i32) -> (i32, i32, i32) {
    %c0_i32 = arith.constant 0 : i32
    %c0_i32_0 = arith.constant 0 : i32
    %c0_i32_1 = arith.constant 0 : i32
    return %arg1, %c0_i32, %c0_i32_0 : i32, i32, i32
  }
  func.func @transform_11(%arg0: i32, %arg1: i32) -> (i32, i32, i32) {
    %c0_i32 = arith.constant 0 : i32
    %c0_i32_0 = arith.constant 0 : i32
    %c0_i32_1 = arith.constant 0 : i32
    return %arg1, %c0_i32, %c0_i32_0 : i32, i32, i32
  }
  func.func @transform_12(%arg0: i32, %arg1: i32) -> (i32, i32, i32) {
    %c0_i32 = arith.constant 0 : i32
    %c0_i32_0 = arith.constant 0 : i32
    %c0_i32_1 = arith.constant 0 : i32
    return %arg1, %c0_i32, %c0_i32_0 : i32, i32, i32
  }
  func.func @transform_13(%arg0: i32, %arg1: i32) -> (i32, i32, i32) {
    %c0_i32 = arith.constant 0 : i32
    %c0_i32_0 = arith.constant 0 : i32
    %c0_i32_1 = arith.constant 0 : i32
    return %arg1, %c0_i32, %c0_i32_0 : i32, i32, i32
  }
  func.func @transform_14(%arg0: i32, %arg1: i32) -> (i32, i32, i32) {
    %c0_i32 = arith.constant 0 : i32
    %c0_i32_0 = arith.constant 0 : i32
    %c0_i32_1 = arith.constant 0 : i32
    return %arg1, %c0_i32, %c0_i32_0 : i32, i32, i32
  }
  func.func @transform_15(%arg0: i32, %arg1: i32) -> (i32, i32, i32) {
    %c0_i32 = arith.constant 0 : i32
    %c0_i32_0 = arith.constant 0 : i32
    %c0_i32_1 = arith.constant 0 : i32
    return %arg1, %c0_i32, %c0_i32_0 : i32, i32, i32
  }
  func.func @transform_16(%arg0: i32, %arg1: i32) -> (i32, i32) {
    %c0_i32 = arith.constant 0 : i32
    %c0_i32_0 = arith.constant 0 : i32
    %c0_i32_1 = arith.constant 0 : i32
    return %c0_i32, %c0_i32_0 : i32, i32
  }
  func.func @transform_17(%arg0: i32, %arg1: i32) -> (i32, i32) {
    %c0_i32 = arith.constant 0 : i32
    %c0_i32_0 = arith.constant 0 : i32
    %c0_i32_1 = arith.constant 0 : i32
    return %c0_i32, %c0_i32_0 : i32, i32
  }
  func.func @transform_18(%arg0: i32, %arg1: i32) -> (i32, i32) {
    %c0_i32 = arith.constant 0 : i32
    %c0_i32_0 = arith.constant 0 : i32
    return %arg0, %c0_i32 : i32, i32
  }
}

</mosaic_0001>

<bundles_post_ra>
// kernel: tpu_custom_call.1
= control target key start
LH: loop header
LB: loop body
LE: loop exit
PB: predicated region body
PF: predicated region fallthrough
CT: control target
= control target key end

     0   :  { %s2659_s0 = inlined_call_operand.vmem [shape: f32[16,32], index: 0, kind: input, shape index: {}]   ;;  %s2660_s1 = inlined_call_operand.vmem [shape: f32[2,1,8], index: 1, kind: input, shape index: {}]   ;;  %s2661_s2 = inlined_call_operand.vmem [shape: f32[1,32], index: 2, kind: input, shape index: {}]   ;;  %s2662_s3 = inlined_call_operand.hbm [shape: f32[1,32], index: 3, kind: input, shape index: {}]   ;;  %s2663_s4 = inlined_call_operand.vmem [shape: bf16[2,32,96], index: 4, kind: input, shape index: {}]   ;;  %s2664_s5 = inlined_call_operand.vmem [shape: f32[2,1,96], index: 5, kind: input, shape index: {}]   ;;  %s2665_s6 = inlined_call_operand.vmem [shape: bf16[2,32,32], index: 6, kind: input, shape index: {}]   ;;  %s2666_s7 = inlined_call_operand.vmem [shape: f32[2,1,32], index: 7, kind: input, shape index: {}]   ;;  %s2667_s8 = inlined_call_operand.hbm [shape: f32[2,1,32], index: 8, kind: input, shape index: {}]   ;;  %s2668_s9 = inlined_call_operand.hbm [shape: f32[2,1,32], index: 9, kind: input, shape index: {}]   ;;  %s2669_s10 = inlined_call_operand.vmem [shape: bf16[2,32,64], index: 10, kind: input, shape index: {}]   ;;  %s2670_s11 = inlined_call_operand.vmem [shape: f32[2,1,64], index: 11, kind: input, shape index: {}]   ;;  %s2671_s12 = inlined_call_operand.vmem [shape: bf16[2,64,32], index: 12, kind: input, shape index: {}]   ;;  %s2672_s13 = inlined_call_operand.vmem [shape: f32[2,1,32], index: 13, kind: input, shape index: {}]   ;;  %s2673_s14 = inlined_call_operand.vmem [shape: f32[2,1,32], index: 14, kind: input, shape index: {}]   ;;  %s2674_s15 = inlined_call_operand.hbm [shape: f32[2,1,32], index: 15, kind: input, shape index: {}]   ;;  %s2675_s16 = inlined_call_operand.vmem [shape: bf16[32,5], index: 16, kind: input, shape index: {}]   ;;  %s2676_s17 = inlined_call_operand.vmem [shape: f32[1,5], index: 17, kind: input, shape index: {}]   ;;  %s2677_s18 = inlined_call_operand.vmem [shape: f32[16,5], index: 18, kind: output, shape index: {}]  }
   0x1   :  { %2685 = sst [smem:[#allocation16_spill]] %s2659_s0 }
   0x2   :  { %2686 = sst [smem:[#allocation17_spill]] %s2660_s1 }
   0x3   :  { %2687 = sst [smem:[#allocation18_spill]] %s2661_s2 }
   0x4   :  { %2688 = sst [smem:[#allocation19_spill]] %s2662_s3 }
   0x5   :  { %2689 = sst [smem:[#allocation20_spill]] %s2663_s4 }
   0x6   :  { %2690 = sst [smem:[#allocation21_spill]] %s2665_s6 }
   0x7   :  { %2691 = sst [smem:[#allocation22_spill]] %s2667_s8 }
   0x8   :  { %2692 = sst [smem:[#allocation23_spill]] %s2668_s9 }
   0x9   :  { %2693 = sst [smem:[#allocation24_spill]] %s2670_s11 }
   0xa   :  { %2694 = sst [smem:[#allocation25_spill]] %s2671_s12 }
   0xb   :  { %2695 = sst [smem:[#allocation26_spill]] %s2672_s13 }
   0xc   :  { %2696 = sst [smem:[#allocation27_spill]] %s2673_s14 }
   0xd   :  { %2697 = sst [smem:[#allocation28_spill]] %s2674_s15 }
   0xe   :  { %2698 = sst [smem:[#allocation29_spill]] %s2675_s16 }
   0xf   :  { %2699 = sst [smem:[#allocation30_spill]] %s2676_s17 }
  0x10   :  { %2700 = sst [smem:[#allocation31_spill]] %s2677_s18 }
  0x11   :  { %23 = vsyncpa [#allocation4], 0 }
  0x12   :  { %24 = vsyncpa [#allocation6], 0 }
  0x13   :  { %26 = vsyncpa [#allocation6 + $0x1], 0 }
  0x14   :  { %27 = vsyncpa [#allocation9], 0 }
  0x15   :  { %29 = vsyncpa [#allocation9 + $0x1], 0  ;;  %s2314_s27 = smov 0   ;;  %s2316_s28 = smov 0  }
  0x16   :  { %s2318_s29 = smov 0   ;;  %s2320_s30 = smov 0  }
  0x17   :  { %s2322_s0 = smov 0   ;;  %s2324_s19 = smov 0  }
  0x18 LB: > { %2701 = sst [smem:[#allocation13_spill]] %s2196_s29  ;;  %s44_s1 = sadd.s32 1, %s2204_s0  ;;  %s2208_s19 = sphi %s2324_s19, %s35_s19   ;;  %s2204_s0 = sphi %s2322_s0, %s2740_s0   ;;  %s2200_s30 = sphi %s2320_s30, %s2739_s30   ;;  %s2196_s29 = sphi %s2318_s29, %s2735_s29   ;;  %s2192_s28 = sphi %s2316_s28, %s2738_s28   ;;  %s2188_s27 = sphi %s2314_s27, %s2737_s27  }
  0x19   : > { %s252_s20 = sadd.s32 1, %s2196_s29  ;;  %p45_p0 = scmp.ge.s32.totalorder %s44_s1, 2 }
  0x1a   : > { %p259_p1 = scmp.ne.s32.totalorder %s2196_s29, %s2192_s28  ;;  %p260_p2 = scmp.eq.s32.totalorder %s2208_s19, 0 }
  0x1b   : > { %s2742_s1 = smov (%p45_p0, %s44_s1), 0  ;;  %p1917_p4 = scmp.lt.s32.totalorder %s2208_s19, 2 }
  0x1c   : > { %2702 = sst [smem:[#allocation14_spill]] %s2742_s1  ;;  %p2351_p3 = por %p260_p2, %p259_p1 }
  0x1d   : > { %s249_s22 = ssub.s32 %s2204_s0, %s2742_s1  ;;  %s605_s2 = sand.u32 1, %s2208_s19  }
  0x1e   : > { %p250_p5 = scmp.eq.s32.totalorder %s249_s22, 0  ;;  %s2360_s23 = sand.u32 1, %s2196_s29  }
  0x1f   : > { %s2704_s8 = sld [smem:[#allocation22_spill]]  ;;  %s608_s16 = scalar_lea.vmem [#allocation5], %s2360_s23 }
  0x20   : > { %s2367_s18 = scalar_select %p250_p5, %s2196_s29, %s252_s20  }
  0x21   : > { %s615_s14 = sshll.u32 %s608_s16, 4  ;;  %p2372_p6 = pnand %p1917_p4, %p2351_p3  ;;  %s616_s14 = int_to_ptr.vmem [resolvable:$true] %s615_s14 }
  0x22   : > { %2705 = sst [smem:[#allocation15_spill]] %s2367_s18  ;;  %s606_s22 = scalar_lea.sflag [#allocation6], %s605_s2 }
  0x23   : > { %s2683_s24 = sadd.s32 4294967295, %s2208_s19   ;;  %p265_p7 = scmp.ne.s32.totalorder %s2192_s28, %s2188_s27 }
  0x24   : > { %p2383_p8 = scmp.eq.s32.totalorder %s2683_s24, 0  ;;  %p1793_p9 = scmp.ge.s32.totalorder %s2208_s19, 1 }
  0x25   : > { %s611_s26 = scalar_lea.hbm %s2704_s8, %s2204_s0  ;;  %p526_p10 = scmp.lt.s32.totalorder %s2208_s19, 3 }
  0x26   : > { %s613_s17 = sshll.u32 %s611_s26, 4  ;;  %p2391_p11 = por %p2383_p8, %p265_p7  ;;  %s614_s17 = int_to_ptr.hbm [resolvable:$true] %s613_s17 }
  0x27   : > { %1909 = dma.hbm_to_vmem [thread:$0]  (!%p2372_p6), %s614_s17, 16, %s616_s14, %s606_s22  }
  0x28   : > { %p2395_p12 = pnand %p1793_p9, %p526_p10  ;;  %s2710_s3 = sld [smem:[#allocation19_spill]] }
  0x29   : > { %s2210_s2 = smov [#allocation3]   ;;  %s2711_s9 = sld [smem:[#allocation23_spill]] }
  0x2a   : > { %p1902_p13 = pneg %p2395_p12  ;;  %s560_s25 = sshll.u32 %s2210_s2, 4  ;;  %s561_s25 = int_to_ptr.vmem [resolvable:$true] %s560_s25 }
  0x2b   : > { %s625_s17 = scalar_lea.vmem [#allocation7], %s2360_s23  ;;  %s2712_s15 = sld [smem:[#allocation28_spill]] }
  0x2c   : > { %p1903_p0 = pnand %p1902_p13, %p2383_p8  ;;  %s632_s27 = sshll.u32 %s625_s17, 4  ;;  %s633_s27 = int_to_ptr.vmem [resolvable:$true] %s632_s27 }
  0x2d   : > { %s676_s12 = scalar_lea.vmem [#allocation8], %s2360_s23  ;;  %s674_s24 = scalar_lea.sflag [#allocation9], %s2360_s23 }
  0x2e   : > { %s558_s21 = sshll.u32 %s2710_s3, 4  ;;  %s683_s11 = sshll.u32 %s676_s12, 4  ;;  %s559_s21 = int_to_ptr.hbm [resolvable:$true] %s558_s21  ;;  %s684_s11 = int_to_ptr.vmem [resolvable:$true] %s683_s11 }
  0x2f   : > { %s628_s8 = scalar_lea.hbm %s2711_s9, %s2204_s0 }
  0x30   : > { %s630_s18 = sshll.u32 %s628_s8, 4  ;;  %s631_s18 = int_to_ptr.hbm [resolvable:$true] %s630_s18 }
  0x31   : > { %1905 = dma.hbm_to_vmem [thread:$0]  (!%p1903_p0), %s559_s21, 16, %s561_s25, [#allocation4]  }
  0x32   : > { %1912 = dma.hbm_to_vmem [thread:$0]  (!%p2372_p6), %s631_s18, 16, %s633_s27, %s606_s22  }
  0x33   : > { %s679_s2 = scalar_lea.hbm %s2712_s15, %s2204_s0  ;;  %692 = sbr.rel (%p2395_p12) target bundleno = 2408 (0x968), region = 92 }
  0x34   : > { %s681_s13 = sshll.u32 %s679_s2, 4  ;;  %s682_s13 = int_to_ptr.hbm [resolvable:$true] %s681_s13 }
  0x35   : > { %1915 = dma.hbm_to_vmem [thread:$0]  (!%p2372_p6), %s682_s13, 16, %s684_s11, %s674_s24  }
  0x38   : > { %2175 = dma.done.wait (%p2383_p8), [#allocation4], 16  }
  0x39   : > { %2177 = vsyncadd (%p2383_p8), [#allocation4], 4294967280  ;;  %s2713_s3 = sadd.s32 4294967295, %s2208_s19   ;;  %s2430_s12 = sand.u32 1, %s2192_s28  }
  0x3a   : > { %s699_s8 = sand.u32 1, %s2713_s3  }
  0x3b   : > { %s700_s18 = scalar_lea.sflag [#allocation6], %s699_s8 }
  0x3c   : > { %2179 = dma.done.wait (%p2391_p11), %s700_s18, 32  }
  0x3d   : > { %2181 = vsyncadd (%p2391_p11), %s700_s18, 4294967264  ;;  %s718_s13 = scalar_lea.sflag [#allocation9], %s2430_s12 }
  0x3e   : > { %2183 = dma.done.wait (%p2391_p11), %s718_s13, 16  }
  0x3f   : > { %2185 = vsyncadd (%p2391_p11), %s718_s13, 4294967280  ;;  %p836_p1 = scmp.lt.s32.totalorder %s2200_s30, 1  ;;  %s2714_s4 = sld [smem:[#allocation20_spill]] }
  0x40   : > { %s2715_s6 = sld [smem:[#allocation21_spill]]  ;;  %p1808_p2 = scmp.ne.s32.totalorder %s2200_s30, 0 }
  0x41   : > { %s2446_s23 = scalar_select %p836_p1, %s2200_s30, 1 }
  0x42   : > { %s2716_s11 = sld [smem:[#allocation24_spill]] }
  0x43   : > { %s1876_s22 = sshll.u32 %s2446_s23, 4  ;;  %s1879_s16 = sshll.u32 %s2446_s23, 5 }
  0x44   : > { %s2470_s1 = scalar_lea.vmem %s2669_s10, %s1876_s22  ;;  %s2718_s9 = sld [smem:[#allocation26_spill]] }
  0x45   : > { %s2456_s26 = scalar_lea.vmem %s2714_s4, %s1876_s22  ;;  %s2717_s4 = sld [smem:[#allocation25_spill]] }
  0x46   : > { %s2461_s2 = scalar_lea.vmem %s2715_s6, %s1876_s22  ;;  %s2719_s15 = sld [smem:[#allocation27_spill]] }
  0x48   : > { %s859_s25 = scalar_lea.vmem %s2716_s11, %s2446_s23  ;;  %881 = sbr.rel (%p1808_p2) target bundleno = 357 (0x165), region = 112 }
  0x49   : > { %s2720_s11 = sld [smem:[#allocation16_spill]] (!%p1808_p2) }
  0x4a   : > { %s867_s24 = scalar_lea.vmem %s2718_s9, %s2446_s23 }
  0x4b   : > { %s2480_s17 = scalar_lea.vmem %s2717_s4, %s1879_s16 }
  0x4c   : > { %s870_s18 = scalar_lea.vmem %s2719_s15, %s2446_s23  ;;  %s2721_s15 = sld [smem:[#allocation18_spill]] (!%p1808_p2) }
  0x4d   : > { %vm886_vm0 = vcmask 261120   ;;  %v2211_v4 = vmov 32.0   ;;  %v1977_v38 = vld [vmem:[#allocation3] ss:$0 sm:$0xff] }
  0x4e   : > { %1978 = vrcp.f32 %v2211_v4 }
  0x4f   : > { %v882_v0 = vld [vmem:[%s2720_s11] sm:$0xff]  ;;  %v883_v2 = vld [vmem:[%s2720_s11 + $0x8] sm:$0xff] }
  0x50   : > { %v887_v1 = vsel %vm886_vm0, %v882_v0, 0.0  ;;  %v890_v3 = vsel %vm886_vm0, %v883_v2, 0.0 }
  0x51   : > { %888 = vadd.xlane.f32.xlu0 %v887_v1 }
  0x52   : > { %v1976_v35 = vld [vmem:[%s2721_s15] ss:$0 sm:$0xff] }
  0x54   : > { %v1979_v5 = vpop.eup %1978 }
  0x55   : > { %v894_v6 = vmul.f32 32.0, %v1979_v5  ;;  %vm898_vm1 = vweird.f32 %v1979_v5 }
  0x57   : > { %v895_v7 = vsub.f32 1.0, %v894_v6 }
  0x59   : > { %891 = vadd.xlane.f32.xlu0 %v890_v3  ;;  %v896_v8 = vmul.f32 %v1979_v5, %v895_v7 }
  0x5b   : > { %v897_v9 = vadd.f32 %v1979_v5, %v896_v8 }
  0x5d   : > { %v899_v10 = vsel %vm898_vm1, %v1979_v5, %v897_v9 }
  0xc4   : > { %v889_v11 = vpop.xlane.xlu0 %888 }
  0xc5   : > { %v900_v12 = vmul.f32 %v899_v10, %v889_v11 }
  0xc7   : > { %v902_v13 = vsub.f32 %v882_v0, %v900_v12 }
  0xc9   : > { %v904_v14 = vmul.f32 %v902_v13, %v902_v13 }
  0xcb   : > { %v906_v15 = vsel %vm886_vm0, %v904_v14, 0.0 }
  0xcc   : > { %907 = vadd.xlane.f32.xlu1 %v906_v15  ;;  %v892_v16 = vpop.xlane.xlu0 %891 }
  0xcd   : > { %v901_v17 = vmul.f32 %v899_v10, %v892_v16 }
  0xcf   : > { %v903_v18 = vsub.f32 %v883_v2, %v901_v17 }
  0xd1   : > { %v905_v19 = vmul.f32 %v903_v18, %v903_v18 }
  0xd3   : > { %v909_v20 = vsel %vm886_vm0, %v905_v19, 0.0 }
  0xd4   : > { %910 = vadd.xlane.f32.xlu1 %v909_v20 }
 0x13f   : > { %v908_v21 = vpop.xlane.xlu1 %907 }
 0x140   : > { %v912_v22 = vmul.f32 %v908_v21, %v899_v10 }
 0x142   : > { %v914_v23 = vadd.f32 1e-12, %v912_v22 }
 0x144   : > { %1980 = vrsqrt.f32 %v914_v23  ;;  %vm922_vm3 = vweird.f32 %v914_v23 }
 0x147   : > { %v911_v24 = vpop.xlane.xlu1 %910 }
 0x148   : > { %v913_v25 = vmul.f32 %v911_v24, %v899_v10 }
 0x14a   : > { %v1981_v26 = vpop.eup %1980  ;;  %v915_v27 = vadd.f32 1e-12, %v913_v25 }
 0x14b   : > { %v917_v28 = vmul.f32 %v1981_v26, %v914_v23  ;;  %vm923_vm2 = vweird.f32 %v1981_v26 }
 0x14c   : > { %1982 = vrsqrt.f32 %v915_v27  ;;  %vm924_vm4 = vmor %vm922_vm3, %vm923_vm2  ;;  %vm932_vm6 = vweird.f32 %v915_v27 }
 0x14d   : > { %v918_v29 = vmul.f32 %v1981_v26, %v917_v28 }
 0x14f   : > { %v919_v30 = vmul.f32 0.5, %v918_v29 }
 0x151   : > { %v920_v31 = vsub.f32 1.5, %v919_v30 }
 0x152   : > { %v1983_v32 = vpop.eup %1982 }
 0x153   : > { %v921_v33 = vmul.f32 %v1981_v26, %v920_v31  ;;  %v927_v34 = vmul.f32 %v1983_v32, %v915_v27  ;;  %vm933_vm5 = vweird.f32 %v1983_v32 }
 0x154   : > { %vm934_vm7 = vmor %vm932_vm6, %vm933_vm5 }
 0x155   : > { %v925_v36 = vsel %vm924_vm4, %v1981_v26, %v921_v33  ;;  %v928_v37 = vmul.f32 %v1983_v32, %v927_v34 }
 0x156   : > { %v936_v39 = vmul.f32 %v925_v36, %v902_v13 }
 0x157   : > { %v929_v40 = vmul.f32 0.5, %v928_v37 }
 0x158   : > { %v941_v41 = vmul.f32 %v1976_v35, %v936_v39 }
 0x159   : > { %v930_v42 = vsub.f32 1.5, %v929_v40 }
 0x15a   : > { %v946_v43 = vadd.f32 %v1977_v38, %v941_v41 }
 0x15b   : > { %v931_v44 = vmul.f32 %v1983_v32, %v930_v42 }
 0x15c   : > { %948 = vst.msk [vmem:[#allocation2] sm:$0xff] %vm886_vm0, %v946_v43 }
 0x15d   : > { %v935_v45 = vsel %vm934_vm7, %v1983_v32, %v931_v44 }
 0x15e   : > { %v937_v46 = vmul.f32 %v935_v45, %v903_v18 }
 0x160   : > { %v942_v47 = vmul.f32 %v1976_v35, %v937_v46 }
 0x162   : > { %v947_v48 = vadd.f32 %v1977_v38, %v942_v47 }
 0x164   : > { %949 = vst.msk [vmem:[#allocation2 + $0x8] sm:$0xff] %vm886_vm0, %v947_v48 }
 0x165 PF: > { %v1881_v49 = vld [vmem:[%s2456_s26 + $0x8] sm:$0xff]  ;;  %v1880_v50 = vld [vmem:[%s2456_s26] sm:$0xff]  ;;  %vm973_vm8 = vcmask 261120   ;;  %s2722_s20 = scalar_lea.vmem %s2664_s5, %s2446_s23  ;;  %s2212_s26 = smov 112   ;;  %vm999_vm9 = vcmask 130048   ;;  %vm1019_vm10 = vcmask 64512  }
 0x166   : > { %v2508_v51 = vld [vmem:[#allocation2] sm:$0xff]  ;;  %983 = vmatpush.bf16.msra.mxu0 %v1881_v49  ;;  %s2213_s14 = smov 96   ;;  %s2214_s16 = smov 80   ;;  %vm1037_vm11 = vcmask 1043456   ;;  %vm1433_vm3 = vcmask 523264  }
 0x167   : > { %v1989_v54 = vld [vmem:[%s2722_s20] ss:$0 sm:$0xff]  ;;  %s2723_s22 = sld [smem:[#allocation17_spill]]  ;;  %s2215_s29 = smov 64  }
 0x168   : > { %s2216_s6 = smov 48   ;;  %s2217_s9 = smov 16  }
 0x169   : > { %s2724_s8 = scalar_lea.vmem %s2666_s7, %s2446_s23  ;;  %s2730_s13 = scalar_lea.vmem [#allocation8], %s2430_s12 }
 0x16a   : > { %984 = vmatpush.bf16.msra.mxu0 %v1880_v50  ;;  %p1862_p3 = scmp.ne.s32.totalorder %s2200_s30, 1 }
 0x16b   : > { %v2510_v52 = vld [vmem:[#allocation2 + $0x8] sm:$0xff]  ;;  %s2732_s15 = sld [smem:[#allocation30_spill]] (!%p1862_p3) }
 0x16c   : > { %v952_v53 = vpack.c.bf16 %v2510_v52, %v2508_v51 }
 0x16d   : > { %v1990_v7 = vld [vmem:[%s2723_s22 + $0x1] ss:$0 sm:$0xff]  ;;  %v1991_v10 = vld [vmem:[%s2723_s22] ss:$0 sm:$0xff] }
 0x16e   : > { %1817 = vmatmul.msk.bf16.vlgmr.msra.gmra.mxu0 %vm973_vm8, %v952_v53 }
 0x1eb   : > { %v986_v55 = vpop.f32.mrf.mxu0 }
 0x1ec   : > { %v987_v56 = vadd.f32 %v1989_v54, %v986_v55 }
 0x1ee   : > { %v2520_v57 = vpack.c.bf16 %v987_v56, %v987_v56 }
 0x1f0   : > { %1054 = vrot.lane.b32.xlu1 %v2520_v57, %s2212_s26  ;;  %997 = vrot.lane.b32.xlu0 %v2520_v57, %s2213_s14 }
 0x1f3   : > { %v988_v58 = vpop.f32.mrf.mxu0 }
 0x1f4   : > { %v989_v59 = vadd.f32 %v1989_v54, %v988_v58 }
 0x1f6   : > { %v1120_v60 = vpack.c.bf16 %v989_v59, %v989_v59 }
 0x1f8   : > { %1176 = vrot.lane.b32.xlu2 %v1120_v60, %s2212_s26  ;;  %1178 = vrot.lane.b32.xlu1 %v1120_v60, %s2214_s16 }
 0x1f9   : > { %1056 = vrot.lane.b32.xlu0 %v2520_v57, %s2214_s16 }
 0x200   : > { %1122 = vrot.lane.b32.xlu2 %v1120_v60, %s2213_s14 }
 0x252   : > { %v1177_v61 = vpop.permute.xlu2 %1176 }
 0x25a   : > { %v1123_v62 = vpop.permute.xlu2 %1122 }
 0x25b   : > { %v1128_v63 = vsel %vm999_vm9, %v1123_v62, 0 }
 0x25c   : > { %1137 = vmatpush.bf16.xpose.msrb.mxu0 %v1128_v63 }
 0x262   : > { %v1055_v0 = vpop.permute.xlu1 %1054  ;;  %v998_v1 = vpop.permute.xlu0 %997 }
 0x263   : > { %1823 = vmatmul.msk.bf16.vlgmr.msrb.gmra.mxu0 %vm999_vm9, %v1120_v60  ;;  %v1004_v2 = vsel %vm999_vm9, %v998_v1, 0 }
 0x264   : > { %1013 = vmatpush.bf16.xpose.msra.mxu1 %v1004_v2 }
 0x26a   : > { %v1179_v3 = vpop.permute.xlu1 %1178 }
 0x26b   : > { %v1057_v4 = vpop.permute.xlu0 %1056  ;;  %1818 = vmatmul.msk.bf16.vlgmr.msra.gmra.mxu1 %vm999_vm9, %v2520_v57  ;;  %v1184_v5 = vsel %vm999_vm9, %v1179_v3, 0 }
 0x26c   : > { %v1062_v6 = vsel %vm999_vm9, %v1057_v4, 0 }
 0x26d   : > { %1071 = vmatpush.bf16.xpose.msra.mxu3 %v1062_v6 }
 0x274   : > { %1820 = vmatmul.msk.bf16.vlgmr.msra.gmra.mxu3 %vm999_vm9, %v1055_v0 }
 0x275   : > { %1193 = vmatpush.bf16.xpose.msrb.mxu3 %v1184_v5 }
 0x284   : > { %1825 = vmatmul.msk.bf16.vlgmr.msrb.gmra.mxu3 %vm999_vm9, %v1177_v61 }
 0x2e0   : > { %v1139_v8 = vpop.f32.mrf.mxu0 }
 0x2e1   : > { %v2537_v9 = vadd.f32 %v1990_v7, %v1139_v8 }
 0x2e3   : > { %v1143_v40 = vsel %vm1019_vm10, %v2537_v9, -inf }
 0x2e8   : > { %v1015_v11 = vpop.f32.mrf.mxu1  ;;  %v1141_v12 = vpop.f32.mrf.mxu0 }
 0x2e9   : > { %v1016_v13 = vadd.f32 %v1991_v10, %v1015_v11 }
 0x2eb   : > { %v1020_v14 = vsel %vm1019_vm10, %v1016_v13, -inf }
 0x2ec   : > { %1021 = vmax.xlane.f32.xlu0 %v1020_v14  ;;  %v1883_v14 = vld [vmem:[%s2461_s2 + $0x8] sm:$0xff] }
 0x2ed   : > { %1267 = vmatpush.bf16.msra.mxu0 %v1883_v14 }
 0x2f0   : > { %v1017_v15 = vpop.f32.mrf.mxu1 }
 0x2f1   : > { %v1882_v15 = vld [vmem:[%s2461_s2] sm:$0xff]  ;;  %s2726_s2 = scalar_lea.vmem [#allocation7], %s2430_s12 }
 0x2f2   : > { %1268 = vmatpush.bf16.msra.mxu0 %v1882_v15 }
 0x2f7   : > { %v1073_v16 = vpop.f32.mrf.mxu3 }
 0x2f8   : > { %v1074_v17 = vadd.f32 %v1991_v10, %v1073_v16 }
 0x2fa   : > { %v1077_v18 = vsel %vm1019_vm10, %v1074_v17, -inf }
 0x2fb   : > { %1078 = vmax.xlane.f32.xlu1 %v1077_v18 }
 0x2ff   : > { %v1075_v19 = vpop.f32.mrf.mxu3 }
 0x300   : > { %1032 = vrot.lane.b32.xlu0 %v2520_v57, %s2215_s29 }
 0x307   : > { %v1195_v20 = vpop.f32.mrf.mxu3 }
 0x308   : > { %v1196_v21 = vadd.f32 %v1990_v7, %v1195_v20  ;;  %1211 = vrot.lane.b32.xlu0 %v1120_v60, %s2216_s6 }
 0x30a   : > { %v1199_v22 = vsel %vm1019_vm10, %v1196_v21, -inf }
 0x30b   : > { %1200 = vmax.xlane.f32.xlu2 %v1199_v22 }
 0x30f   : > { %v1197_v23 = vpop.f32.mrf.mxu3 }
 0x310   : > { %1155 = vrot.lane.b32.xlu0 %v1120_v60, %s2215_s29 }
 0x35f   : > { %v1022_v24 = vpop.xlane.xlu0 %1021 }
 0x360   : > { %v1023_v25 = vsub.f32 %v1016_v13, %v1022_v24  ;;  %v1992_v24 = vld [vmem:[%s2724_s8] ss:$0 sm:$0xff]  ;;  %s2733_s8 = sld [smem:[#allocation31_spill]] (!%p1862_p3) }
 0x362   : > { %v1024_v26 = vmul.f32 1.442695, %v1023_v25 }
 0x364   : > { %1999 = vpow2.f32 %v1024_v26 }
 0x36a   : > { %v2000_v27 = vpop.eup %1999 }
 0x36b   : > { %v1026_v28 = vsel %vm1019_vm10, %v2000_v27, 0.0 }
 0x36c   : > { %1027 = vadd.xlane.f32.xlu2 %v1026_v28 }
 0x36e   : > { %v1079_v29 = vpop.xlane.xlu1 %1078 }
 0x36f   : > { %v1080_v30 = vsub.f32 %v1074_v17, %v1079_v29 }
 0x371   : > { %v1081_v31 = vmul.f32 1.442695, %v1080_v30 }
 0x372   : > { %v1033_v32 = vpop.permute.xlu0 %1032 }
 0x373   : > { %2001 = vpow2.f32 %v1081_v31  ;;  %v1039_v33 = vsel %vm1037_vm11, %v1033_v32, 0 }
 0x374   : > { %1048 = vmatpush.bf16.msra.mxu2 %v1039_v33  ;;  %v2218_v33 = vmov 32.0  }
 0x379   : > { %v2002_v34 = vpop.eup %2001 }
 0x37a   : > { %v1083_v35 = vsel %vm1019_vm10, %v2002_v34, 0.0  ;;  %v1212_v36 = vpop.permute.xlu0 %1211 }
 0x37b   : > { %1084 = vadd.xlane.f32.xlu1 %v1083_v35  ;;  %v1217_v53 = vsel %vm1037_vm11, %v1212_v36, 0 }
 0x37e   : > { %v1201_v37 = vpop.xlane.xlu2 %1200 }
 0x37f   : > { %v1202_v38 = vsub.f32 %v1196_v21, %v1201_v37 }
 0x381   : > { %v1203_v39 = vmul.f32 1.442695, %v1202_v38 }
 0x382   : > { %v1156_v41 = vpop.permute.xlu0 %1155 }
 0x383   : > { %2003 = vpow2.f32 %v1203_v39  ;;  %1144 = vmax.xlane.f32.xlu1 %v1143_v40  ;;  %v1161_v42 = vsel %vm1037_vm11, %v1156_v41, 0 }
 0x384   : > { %1089 = vrot.lane.b32.xlu2 %v2520_v57, %s2216_s6  ;;  %1170 = vmatpush.bf16.msrb.mxu1 %v1161_v42 }
 0x389   : > { %v2004_v43 = vpop.eup %2003 }
 0x38a   : > { %v1205_v44 = vsel %vm1019_vm10, %v2004_v43, 0.0 }
 0x38b   : > { %1206 = vadd.xlane.f32.xlu1 %v1205_v44 }
 0x3df   : > { %v1028_v45 = vpop.xlane.xlu2 %1027 }
 0x3e0   : > { %2005 = vrcp.f32 %v1028_v45 }
 0x3e6   : > { %v2006_v46 = vpop.eup %2005 }
 0x3e7   : > { %v1090_v47 = vpop.permute.xlu2 %1089  ;;  %v1030_v48 = vmul.f32 %v2006_v46, %v2000_v27 }
 0x3e8   : > { %v1095_v49 = vsel %vm1037_vm11, %v1090_v47, 0 }
 0x3e9   : > { %1104 = vmatpush.bf16.msrb.mxu2 %v1095_v49  ;;  %v1031_v50 = vpack.c.bf16 %v1030_v48, %v1030_v48  ;;  %v1885_v48 = vld [vmem:[%s2470_s1 + $0x8] sm:$0xff] }
 0x3ea   : > { %1370 = vmatpush.bf16.msra.mxu1 %v1885_v48 }
 0x3eb   : > { %1819 = vmatmul.msk.bf16.vlgmr.msra.gmra.mxu2 %vm1019_vm10, %v1031_v50 }
 0x3ed   : > { %1226 = vmatpush.bf16.msra.mxu2 %v1217_v53  ;;  %v1884_v53 = vld [vmem:[%s2470_s1] sm:$0xff]  ;;  %s2725_s1 = scalar_lea.vmem [#allocation5], %s2430_s12 }
 0x3ee   : > { %v1085_v54 = vpop.xlane.xlu1 %1084  ;;  %1371 = vmatpush.bf16.msra.mxu1 %v1884_v53 }
 0x3ef   : > { %2007 = vrcp.f32 %v1085_v54 }
 0x3f5   : > { %v2008_v55 = vpop.eup %2007 }
 0x3f6   : > { %v1087_v56 = vmul.f32 %v2008_v55, %v2002_v34  ;;  %v1145_v57 = vpop.xlane.xlu1 %1144 }
 0x3f7   : > { %v1146_v58 = vsub.f32 %v2537_v9, %v1145_v57 }
 0x3f8   : > { %v1088_v60 = vpack.c.bf16 %v1087_v56, %v1087_v56 }
 0x3f9   : > { %v1147_v59 = vmul.f32 1.442695, %v1146_v58 }
 0x3fb   : > { %2009 = vpow2.f32 %v1147_v59  ;;  %1821 = vmatmul.msk.bf16.vlgmr.msrb.gmra.mxu2 %vm1019_vm10, %v1088_v60 }
 0x3fe   : > { %v1207_v61 = vpop.xlane.xlu1 %1206 }
 0x3ff   : > { %2011 = vrcp.f32 %v1207_v61 }
 0x401   : > { %v2010_v62 = vpop.eup %2009 }
 0x402   : > { %v1149_v63 = vsel %vm1019_vm10, %v2010_v62, 0.0 }
 0x403   : > { %1150 = vadd.xlane.f32.xlu1 %v1149_v63 }
 0x405   : > { %v2012_v0 = vpop.eup %2011 }
 0x406   : > { %v1209_v1 = vmul.f32 %v2012_v0, %v2004_v43 }
 0x408   : > { %v1210_v2 = vpack.c.bf16 %v1209_v1, %v1209_v1 }
 0x40b   : > { %1826 = vmatmul.msk.bf16.vlgmr.msra.gmra.mxu2 %vm1019_vm10, %v1210_v2 }
 0x46e   : > { %v1050_v3 = vpop.f32.mrf.mxu2 }
 0x476   : > { %v1151_v4 = vpop.xlane.xlu1 %1150  ;;  %v1052_v5 = vpop.f32.mrf.mxu2 }
 0x477   : > { %2013 = vrcp.f32 %v1151_v4 }
 0x478   : > { %2015 = vrcp.f32 %v2218_v33 }
 0x47d   : > { %v2014_v6 = vpop.eup %2013 }
 0x47e   : > { %v1153_v7 = vmul.f32 %v2014_v6, %v2010_v62  ;;  %v1106_v8 = vpop.f32.mrf.mxu2  ;;  %v2016_v34 = vpop.eup %2015  ;;  %v1993_v6 = vld [vmem:[%s2725_s1] ss:$0 sm:$0xff] }
 0x47f   : > { %v1286_v35 = vmul.f32 32.0, %v2016_v34  ;;  %vm1290_vm12 = vweird.f32 %v2016_v34 }
 0x480   : > { %v1154_v9 = vpack.c.bf16 %v1153_v7, %v1153_v7 }
 0x481   : > { %v1287_v36 = vsub.f32 1.0, %v1286_v35 }
 0x482   : > { %1824 = vmatmul.msk.bf16.vlgmr.msrb.gmra.mxu1 %vm1019_vm10, %v1154_v9 }
 0x483   : > { %v1288_v37 = vmul.f32 %v2016_v34, %v1287_v36 }
 0x485   : > { %v1289_v38 = vadd.f32 %v2016_v34, %v1288_v37 }
 0x486   : > { %v1108_v10 = vpop.f32.mrf.mxu2 }
 0x487   : > { %v1994_v10 = vld [vmem:[%s2726_s2] ss:$0 sm:$0xff] }
 0x48e   : > { %v1228_v11 = vpop.f32.mrf.mxu2 }
 0x48f   : > { %v1984_v12 = vpack.i.bf16 %v1228_v11, %v1106_v8 }
 0x491   : > { %1985 = vrot.lane.b32.xlu2 %v1984_v12, %s2217_s9 }
 0x496   : > { %v1230_v13 = vpop.f32.mrf.mxu2 }
 0x4eb   : > { %v1986_v16 = vpop.permute.xlu2 %1985 }
 0x4ec   : > { %v1987_v17 = vunpack.i.l.bf16 %v1986_v16  ;;  %v1988_v18 = vunpack.i.h.bf16 %v1986_v16 }
 0x4ee   : > { %v1114_v20 = vsel %vm999_vm9, %v1050_v3, %v1987_v17  ;;  %v1889_v17 = vld [vmem:[%s2480_s17 + $0x18] sm:$0xff] }
 0x4ef   : > { %1441 = vmatpush.bf16.msra.mxu3 %v1889_v17  ;;  %v1998_v17 = vld [vmem:[%s2730_s13] ss:$0 sm:$0xff] }
 0x4ff   : > { %v1172_v19 = vpop.f32.mrf.mxu1 }
 0x500   : > { %v1236_v21 = vsel %vm999_vm9, %v1172_v19, %v1988_v18  ;;  %v1888_v18 = vld [vmem:[%s2480_s17 + $0x10] sm:$0xff]  ;;  %v1887_v19 = vld [vmem:[%s2480_s17 + $0x8] sm:$0xff] }
 0x501   : > { %v1237_v22 = vpack.c.bf16 %v1236_v21, %v1114_v20  ;;  %1442 = vmatpush.bf16.msra.mxu3 %v1888_v18  ;;  %v1886_v20 = vld [vmem:[%s2480_s17] sm:$0xff] }
 0x502   : > { %v1995_v21 = vld [vmem:[%s859_s25] ss:$0 sm:$0xff] }
 0x503   : > { %1835 = vmatmul.msk.bf16.vlgmr.msra.gmra.mxu0 %vm973_vm8, %v1237_v22 }
 0x505   : > { %1443 = vmatpush.bf16.msra.mxu3 %v1887_v19 }
 0x507   : > { %v1174_v23 = vpop.f32.mrf.mxu1 }
 0x509   : > { %1444 = vmatpush.bf16.msra.mxu3 %v1886_v20 }
 0x580   : > { %v1270_v25 = vpop.f32.mrf.mxu0 }
 0x581   : > { %v1271_v26 = vadd.f32 %v1992_v24, %v1270_v25 }
 0x583   : > { %v1275_v27 = vadd.f32 %v1271_v26, %v2508_v51  ;;  %v2578_v51 = vsel %vm1290_vm12, %v2016_v34, %v1289_v38 }
 0x585   : > { %v1279_v28 = vsel %vm973_vm8, %v1275_v27, 0.0 }
 0x586   : > { %1280 = vadd.xlane.f32.xlu1 %v1279_v28 }
 0x588   : > { %v1272_v29 = vpop.f32.mrf.mxu0 }
 0x589   : > { %v1273_v30 = vadd.f32 %v1992_v24, %v1272_v29 }
 0x58b   : > { %v1276_v31 = vadd.f32 %v1273_v30, %v2510_v52 }
 0x58d   : > { %v1282_v32 = vsel %vm973_vm8, %v1276_v31, 0.0 }
 0x58e   : > { %1283 = vadd.xlane.f32.xlu0 %v1282_v32 }
 0x5f9   : > { %v1281_v39 = vpop.xlane.xlu1 %1280 }
 0x5fa   : > { %v1292_v40 = vmul.f32 %v2578_v51, %v1281_v39 }
 0x5fc   : > { %v1294_v41 = vsub.f32 %v1275_v27, %v1292_v40 }
 0x5fe   : > { %v1296_v52 = vmul.f32 %v1294_v41, %v1294_v41 }
 0x600   : > { %v1298_v42 = vsel %vm973_vm8, %v1296_v52, 0.0 }
 0x601   : > { %v1284_v43 = vpop.xlane.xlu0 %1283  ;;  %1299 = vadd.xlane.f32.xlu2 %v1298_v42 }
 0x602   : > { %v1293_v44 = vmul.f32 %v2578_v51, %v1284_v43 }
 0x604   : > { %v1295_v45 = vsub.f32 %v1276_v31, %v1293_v44  ;;  %v1996_v44 = vld [vmem:[%s867_s24] ss:$0 sm:$0xff] }
 0x606   : > { %v1297_v46 = vmul.f32 %v1295_v45, %v1295_v45 }
 0x608   : > { %v1301_v47 = vsel %vm973_vm8, %v1297_v46, 0.0 }
 0x609   : > { %1302 = vadd.xlane.f32.xlu1 %v1301_v47 }
 0x674   : > { %v1300_v49 = vpop.xlane.xlu2 %1299 }
 0x675   : > { %v1304_v50 = vmul.f32 %v1300_v49, %v2578_v51 }
 0x677   : > { %v1306_v54 = vadd.f32 1e-12, %v1304_v50 }
 0x679   : > { %2017 = vrsqrt.f32 %v1306_v54  ;;  %vm1314_vm14 = vweird.f32 %v1306_v54 }
 0x67c   : > { %v1303_v55 = vpop.xlane.xlu1 %1302 }
 0x67d   : > { %v1305_v56 = vmul.f32 %v1303_v55, %v2578_v51 }
 0x67f   : > { %v2018_v57 = vpop.eup %2017  ;;  %v1307_v58 = vadd.f32 1e-12, %v1305_v56 }
 0x680   : > { %v1309_v59 = vmul.f32 %v2018_v57, %v1306_v54  ;;  %vm1315_vm13 = vweird.f32 %v2018_v57 }
 0x681   : > { %2019 = vrsqrt.f32 %v1307_v58  ;;  %vm1316_vm15 = vmor %vm1314_vm14, %vm1315_vm13  ;;  %vm1324_vm1 = vweird.f32 %v1307_v58 }
 0x682   : > { %v1310_v60 = vmul.f32 %v2018_v57, %v1309_v59 }
 0x684   : > { %v1311_v61 = vmul.f32 0.5, %v1310_v60 }
 0x686   : > { %v1312_v62 = vsub.f32 1.5, %v1311_v61 }
 0x687   : > { %v2020_v63 = vpop.eup %2019 }
 0x688   : > { %v1313_v0 = vmul.f32 %v2018_v57, %v1312_v62  ;;  %v1319_v1 = vmul.f32 %v2020_v63, %v1307_v58  ;;  %vm1325_vm0 = vweird.f32 %v2020_v63 }
 0x689   : > { %vm1326_vm2 = vmor %vm1324_vm1, %vm1325_vm0 }
 0x68a   : > { %v1320_v2 = vmul.f32 %v2020_v63, %v1319_v1  ;;  %v1317_v3 = vsel %vm1316_vm15, %v2018_v57, %v1313_v0 }
 0x68b   : > { %v1328_v7 = vmul.f32 %v1317_v3, %v1294_v41 }
 0x68c   : > { %v1321_v4 = vmul.f32 0.5, %v1320_v2 }
 0x68d   : > { %v1333_v11 = vmul.f32 %v1993_v6, %v1328_v7 }
 0x68e   : > { %v1322_v5 = vsub.f32 1.5, %v1321_v4 }
 0x68f   : > { %v1338_v14 = vadd.f32 %v1994_v10, %v1333_v11 }
 0x690   : > { %v1323_v8 = vmul.f32 %v2020_v63, %v1322_v5 }
 0x692   : > { %v1327_v9 = vsel %vm1326_vm2, %v2020_v63, %v1323_v8 }
 0x693   : > { %v1329_v12 = vmul.f32 %v1327_v9, %v1295_v45 }
 0x695   : > { %v1334_v13 = vmul.f32 %v1993_v6, %v1329_v12 }
 0x697   : > { %v1339_v15 = vadd.f32 %v1994_v10, %v1334_v13 }
 0x699   : > { %v1340_v16 = vpack.c.bf16 %v1339_v15, %v1338_v14 }
 0x69b   : > { %1844 = vmatmul.msk.bf16.vlgmr.msra.gmra.mxu1 %vm973_vm8, %v1340_v16 }
 0x718   : > { %v1373_v22 = vpop.f32.mrf.mxu1 }
 0x719   : > { %v1374_v23 = vadd.f32 %v1995_v21, %v1373_v22 }
 0x71b   : > { %v1380_v24 = vmul.f32 0.044715, %v1374_v23  ;;  %v1378_v39 = vmul.f32 0.5, %v1374_v23 }
 0x71d   : > { %v1382_v25 = vmul.f32 %v1380_v24, %v1374_v23 }
 0x71f   : > { %v1384_v26 = vmul.f32 %v1382_v25, %v1374_v23 }
 0x720   : > { %v1375_v27 = vpop.f32.mrf.mxu1 }
 0x721   : > { %v1386_v28 = vadd.f32 %v1384_v26, %v1374_v23  ;;  %v1376_v29 = vadd.f32 %v1995_v21, %v1375_v27 }
 0x723   : > { %v1381_v30 = vmul.f32 0.044715, %v1376_v29  ;;  %v1388_v31 = vmul.f32 0.7978846, %v1386_v28  ;;  %v1379_v40 = vmul.f32 0.5, %v1376_v29 }
 0x725   : > { %v1383_v32 = vmul.f32 %v1381_v30, %v1376_v29  ;;  %2021 = vtanh.f32 %v1388_v31 }
 0x727   : > { %v1385_v33 = vmul.f32 %v1383_v32, %v1376_v29 }
 0x729   : > { %v1387_v34 = vadd.f32 %v1385_v33, %v1376_v29 }
 0x72b   : > { %v1389_v35 = vmul.f32 0.7978846, %v1387_v34  ;;  %v2022_v36 = vpop.eup %2021 }
 0x72c   : > { %v1392_v37 = vadd.f32 1.0, %v2022_v36 }
 0x72d   : > { %2023 = vtanh.f32 %v1389_v35 }
 0x72e   : > { %v1394_v52 = vmul.f32 %v1392_v37, %v1378_v39 }
 0x733   : > { %v2024_v38 = vpop.eup %2023 }
 0x734   : > { %v1393_v41 = vadd.f32 1.0, %v2024_v38 }
 0x736   : > { %v1395_v42 = vmul.f32 %v1393_v41, %v1379_v40 }
 0x738   : > { %v1396_v43 = vpack.c.bf16 %v1395_v42, %v1394_v52 }
 0x73a   : > { %1861 = vmatmul.msk.bf16.vlgmr.msra.gmra.mxu3 %vm1433_vm3, %v1396_v43 }
 0x7bd   : > { %v1446_v45 = vpop.f32.mrf.mxu3 }
 0x7be   : > { %v1447_v46 = vadd.f32 %v1996_v44, %v1446_v45 }
 0x7c0   : > { %v1451_v47 = vadd.f32 %v1447_v46, %v1338_v14 }
 0x7c2   : > { %v1455_v48 = vsel %vm973_vm8, %v1451_v47, 0.0 }
 0x7c3   : > { %1456 = vadd.xlane.f32.xlu1 %v1455_v48 }
 0x7c5   : > { %v1448_v49 = vpop.f32.mrf.mxu3 }
 0x7c6   : > { %v1449_v50 = vadd.f32 %v1996_v44, %v1448_v49 }
 0x7c8   : > { %v1452_v53 = vadd.f32 %v1449_v50, %v1339_v15  ;;  %v1997_v15 = vld [vmem:[%s870_s18] ss:$0 sm:$0xff]  ;;  %s2731_s18 = sld [smem:[#allocation29_spill]] (!%p1862_p3) }
 0x7ca   : > { %v1458_v54 = vsel %vm973_vm8, %v1452_v53, 0.0 }
 0x7cb   : > { %1459 = vadd.xlane.f32.xlu1 %v1458_v54 }
 0x836   : > { %v1457_v55 = vpop.xlane.xlu1 %1456 }
 0x837   : > { %v1461_v56 = vmul.f32 %v1457_v55, %v2578_v51 }
 0x839   : > { %v1463_v57 = vsub.f32 %v1451_v47, %v1461_v56 }
 0x83b   : > { %v1465_v58 = vmul.f32 %v1463_v57, %v1463_v57 }
 0x83d   : > { %v1467_v59 = vsel %vm973_vm8, %v1465_v58, 0.0 }
 0x83e   : > { %1468 = vadd.xlane.f32.xlu1 %v1467_v59  ;;  %v1460_v60 = vpop.xlane.xlu1 %1459 }
 0x83f   : > { %v1462_v61 = vmul.f32 %v1460_v60, %v2578_v51 }
 0x841   : > { %v1464_v62 = vsub.f32 %v1452_v53, %v1462_v61 }
 0x843   : > { %v1466_v63 = vmul.f32 %v1464_v62, %v1464_v62 }
 0x845   : > { %v1470_v0 = vsel %vm973_vm8, %v1466_v63, 0.0 }
 0x846   : > { %1471 = vadd.xlane.f32.xlu1 %v1470_v0 }
 0x8b1   : > { %v1469_v1 = vpop.xlane.xlu1 %1468 }
 0x8b2   : > { %v1473_v2 = vmul.f32 %v1469_v1, %v2578_v51 }
 0x8b4   : > { %v1475_v3 = vadd.f32 1e-12, %v1473_v2 }
 0x8b6   : > { %2025 = vrsqrt.f32 %v1475_v3  ;;  %vm1483_vm5 = vweird.f32 %v1475_v3 }
 0x8b9   : > { %v1472_v4 = vpop.xlane.xlu1 %1471 }
 0x8ba   : > { %v1474_v5 = vmul.f32 %v1472_v4, %v2578_v51 }
 0x8bc   : > { %v2026_v6 = vpop.eup %2025  ;;  %v1476_v7 = vadd.f32 1e-12, %v1474_v5 }
 0x8bd   : > { %v1478_v8 = vmul.f32 %v2026_v6, %v1475_v3  ;;  %vm1484_vm4 = vweird.f32 %v2026_v6 }
 0x8be   : > { %2027 = vrsqrt.f32 %v1476_v7  ;;  %vm1485_vm6 = vmor %vm1483_vm5, %vm1484_vm4  ;;  %vm1493_vm9 = vweird.f32 %v1476_v7 }
 0x8bf   : > { %v1479_v9 = vmul.f32 %v2026_v6, %v1478_v8 }
 0x8c1   : > { %v1480_v10 = vmul.f32 0.5, %v1479_v9 }
 0x8c3   : > { %v1481_v11 = vsub.f32 1.5, %v1480_v10 }
 0x8c4   : > { %v2028_v12 = vpop.eup %2027 }
 0x8c5   : > { %v1482_v13 = vmul.f32 %v2026_v6, %v1481_v11  ;;  %v1488_v14 = vmul.f32 %v2028_v12, %v1476_v7  ;;  %vm1494_vm7 = vweird.f32 %v2028_v12 }
 0x8c6   : > { %vm1495_vm10 = vmor %vm1493_vm9, %vm1494_vm7 }
 0x8c7   : > { %v1486_v51 = vsel %vm1485_vm6, %v2026_v6, %v1482_v13  ;;  %v1489_v16 = vmul.f32 %v2028_v12, %v1488_v14 }
 0x8c8   : > { %v1497_v18 = vmul.f32 %v1486_v51, %v1463_v57 }
 0x8c9   : > { %v1490_v19 = vmul.f32 0.5, %v1489_v16 }
 0x8ca   : > { %v1502_v20 = vmul.f32 %v1997_v15, %v1497_v18 }
 0x8cb   : > { %v1491_v21 = vsub.f32 1.5, %v1490_v19 }
 0x8cc   : > { %v1507_v22 = vadd.f32 %v1998_v17, %v1502_v20 }
 0x8cd   : > { %v1492_v23 = vmul.f32 %v2028_v12, %v1491_v21 }
 0x8ce   : > { %1509 = vst.msk [vmem:[#allocation2] sm:$0xff] %vm973_vm8, %v1507_v22 }
 0x8cf   : > { %v1496_v24 = vsel %vm1495_vm10, %v2028_v12, %v1492_v23 }
 0x8d0   : > { %v1498_v25 = vmul.f32 %v1496_v24, %v1464_v62 }
 0x8d2   : > { %v1503_v26 = vmul.f32 %v1997_v15, %v1498_v25  ;;  %1514 = sbr.rel (%p1862_p3) target bundleno = 2408 (0x968), region = 116 }
 0x8d4   : > { %v1508_v27 = vadd.f32 %v1998_v17, %v1503_v26 }
 0x8d6   : > { %1510 = vst.msk [vmem:[#allocation2 + $0x8] sm:$0xff] %vm973_vm8, %v1508_v27 }
 0x8d7   : > { %v1891_v28 = vld [vmem:[%s2731_s18 + $0x8] sm:$0xff]  ;;  %v1890_v29 = vld [vmem:[%s2731_s18] sm:$0xff]  ;;  %v1515_v30 = vpack.c.bf16 %v1508_v27, %v1507_v22  ;;  %vm1553_vm11 = vcmask 39936  }
 0x8d8   : > { %1545 = vmatpush.bf16.msra.mxu0 %v1891_v28  ;;  %v2029_v31 = vld [vmem:[%s2732_s15] ss:$0 sm:$0xff] }
 0x8dc   : > { %1546 = vmatpush.bf16.msra.mxu0 %v1890_v29 }
 0x8df   : > { %1871 = vmatmul.msk.bf16.vlgmr.msra.gmra.mxu0 %vm973_vm8, %v1515_v30 }
 0x95c   : > { %v1548_v32 = vpop.f32.mrf.mxu0 }
 0x95d   : > { %v1549_v33 = vadd.f32 %v2029_v31, %v1548_v32 }
 0x95f   : > { %1554 = vst.msk [vmem:[%s2733_s8] sm:$0xff] %vm1553_vm11, %v1549_v33 }
 0x964   : > { %v1550_v34 = vpop.f32.mrf.mxu0 }
 0x965   : > { %v1551_v35 = vadd.f32 %v2029_v31, %v1550_v34 }
 0x967   : > { %1555 = vst.msk [vmem:[%s2733_s8 + $0x8] sm:$0xff] %vm1553_vm11, %v1551_v35 }
 0x968 PF: > { %s35_s19 = sadd.s32 1, %s2208_s19   ;;  %s2734_s20 = sld [smem:[#allocation13_spill]] }
 0x969   : > { %p32_p4 = scmp.ge.s32.totalorder %s35_s19, 4   ;;  %s2735_s29 = sld [smem:[#allocation15_spill]] }
 0x96a   : > { %s2736_s26 = sld [smem:[#allocation14_spill]]  ;;  %s2737_s27 = smov %s2192_s28 }
 0x96b   : > { %s2739_s30 = smov %s2204_s0 }
 0x96c   :  { %34 = sbr.rel (!%p32_p4) target bundleno = 24 (0x18), region = 203 }
 0x96e   : > { %s2738_s28 = smov %s2734_s20 }
 0x970   : > { %s2740_s0 = smov %s2736_s26 }
 0x971   :  { %1578 = vsyncpa [#allocation4], 1 }
 0x972   :  { %1580 = vsyncpa [#allocation4 + $0x1], 1 }
 0x973   :  { %1581 = vsyncpa [#allocation6], 1 }
 0x974   :  { %1583 = vsyncpa [#allocation6 + $0x1], 1 }
 0x975   :  { %1584 = vsyncpa [#allocation9], 1 }
 0x976   :  { %1586 = vsyncpa [#allocation9 + $0x1], 1 }

</bundles_post_ra>
